<compile_context>
chip_gen: v7x
topology: tpu7x:2x2x1
jax: 0.10.0
libtpu: 0.0.40
codegen_flags: <defaults>
</compile_context>

<pallas_src>
import functools

import jax
import jax.numpy as jnp
import numpy as np
from jax import lax
from jax.experimental import pallas as pl
from jax.experimental.pallas import tpu as pltpu


def _cons_loss_kernel(rfx_ref, rfy_ref, d_ref, t_ref, nm_ref, m_ref,
                      d_top_ref, d_bot_ref, g_top_ref, g_bot_ref,
                      sum_ref, cnt_ref, *, cx, cy):
    b = pl.program_id(0)
    ti = pl.program_id(1)
    n_tiles = pl.num_programs(1)
    TH = d_ref.shape[2]
    Wp = d_ref.shape[3]

    ri = lax.broadcasted_iota(jnp.int32, (TH, Wp), 0)
    ci = lax.broadcasted_iota(jnp.int32, (TH, Wp), 1)
    not_left = ci > 0
    not_right = ci < Wp - 1
    row_first = ri == 0
    row_last = ri == TH - 1
    ci1 = lax.broadcasted_iota(jnp.int32, (1, Wp), 1)
    nl1 = ci1 > 0
    nr1 = ci1 < Wp - 1
    zero = jnp.float32(0.0)

    def cshift(v, dc):
        # s[i, j] = v[i, j + dc] with zero padding at the true left/right edges.
        nl, nr = (not_left, not_right) if v.shape[0] == TH else (nl1, nr1)
        r = pltpu.roll(v, (-dc) % Wp, axis=1)
        return jnp.where(nl if dc == -1 else nr, r, zero)

    def rshift(v, dr, top_row, bot_row):
        # s[i, j] = v[i + dr, j]; out-of-tile rows come from the (1, Wp) halos.
        r = pltpu.roll(v, (-dr) % TH, axis=0)
        if dr == -1:
            return jnp.where(row_first, jnp.broadcast_to(top_row, r.shape), r)
        return jnp.where(row_last, jnp.broadcast_to(bot_row, r.shape), r)

    def halo_rows(top_ref, bot_ref):
        # Row (ti*TH - 1) is the last row of the 8-row block above the tile;
        # row ((ti+1)*TH) is the first row of the block below.  On the global
        # top/bottom tiles the halo is the conv zero-padding -> zero the value.
        top = top_ref[0, 0].astype(jnp.float32)[7:8, :]
        bot = bot_ref[0, 0].astype(jnp.float32)[0:1, :]
        top = jnp.where(ti > 0, top, zero)
        bot = jnp.where(ti < n_tiles - 1, bot, zero)
        return top, bot

    def smooth_h(x):
        return 0.125 * (cshift(x, -1) + cshift(x, +1)) + 0.25 * x

    def sobel_x(x, x_top, x_bot):
        # get_grad_1 x-channel (* 100): separable = 100*(sv[:, j+1] - sv[:, j-1]).
        u = rshift(x, -1, x_top, x_bot)
        dn = rshift(x, +1, x_top, x_bot)
        sv = 0.125 * (u + dn) + 0.25 * x
        return 100.0 * (cshift(sv, +1) - cshift(sv, -1))

    def sobel_y(x, x_top, x_bot):
        # get_grad_1 y-channel (* 100): separable = 100*(sh[i+1, :] - sh[i-1, :]).
        sh = smooth_h(x)
        sh_top = smooth_h(x_top)
        sh_bot = smooth_h(x_bot)
        return 100.0 * (rshift(sh, +1, sh_top, sh_bot) -
                        rshift(sh, -1, sh_top, sh_bot))

    d = d_ref[0, 0].astype(jnp.float32)          # (TH, Wp) depth tile
    g = t_ref[0, 0].astype(jnp.float32)          # (TH, Wp) target-depth tile
    m = m_ref[0, 0] != 0                         # pad pixels are False

    d_top, d_bot = halo_rows(d_top_ref, d_bot_ref)
    g_top, g_bot = halo_rows(g_top_ref, g_bot_ref)

    # get_grad_2 shared terms (analytic gradient from normal map + intrinsics).
    nz = nm_ref[0, 2].astype(jnp.float32)
    nz = jnp.where(nz == 0.0, jnp.float32(1e-10), nz)
    inv_nz = pl.reciprocal(nz, approx=True)
    ngx = nm_ref[0, 0].astype(jnp.float32) * inv_nz
    ngy = nm_ref[0, 1].astype(jnp.float32) * inv_nz

    rfx = rfx_ref[b]                             # 1/fx (scalar, SMEM)
    rfy = rfy_ref[b]                             # 1/fy
    px = ci.astype(jnp.float32) - cx
    py = (ri + ti * TH).astype(jnp.float32) - cy
    denom = 1.0 + px * (ngx * rfx) + py * (ngy * rfy)
    denom = jnp.where(denom == 0.0, jnp.float32(1e-10), denom)
    base = d * pl.reciprocal(denom, approx=True)   # depth / denom

    def masked_smooth_l1(g1, g2, tg):
        sel = (jnp.abs(tg) < 1.0) & m & (jnp.abs(g1) < 5.0) & (jnp.abs(g2) < 5.0)
        diff = g1 - g2
        ad = jnp.abs(diff)
        l = jnp.where(sel, jnp.where(ad < 1.0, 0.5 * diff * diff, ad - 0.5), zero)
        return jnp.sum(l), jnp.sum(sel.astype(jnp.float32))

    # x channel processed to completion before y (fewer live full-plane temps).
    loss_x, n_x = masked_smooth_l1(sobel_x(d, d_top, d_bot),
                                   (-100.0 * rfx) * ngx * base,
                                   sobel_x(g, g_top, g_bot))
    loss_y, n_y = masked_smooth_l1(sobel_y(d, d_top, d_bot),
                                   (-100.0 * rfy) * ngy * base,
                                   sobel_y(g, g_top, g_bot))

    # Per-(batch, tile) partial results in lane-dense blocks; mean in wrapper.
    sum_ref[...] = jnp.full(sum_ref.shape, loss_x + loss_y, jnp.float32)
    cnt_ref[...] = jnp.full(cnt_ref.shape, n_x + n_y, jnp.float32)


def _round_up(x, m):
    return (x + m - 1) // m * m


def cons_loss(depth, tgt_depth, nmap, intrinsics, mask, *, tile_h=None):
    """depth/tgt_depth/mask: (B,1,H,W); nmap: (B,3,H,W); intrinsics: (B,3,3)."""
    B, _, H, W = depth.shape
    Wp = _round_up(W, 128)

    # Tile height: largest multiple of 8 whose double-buffered input blocks plus
    # ~10 live f32 intermediate planes stay within ~28 MiB (headroom under the
    # VMEM limit requested below, which itself leaves room on v7x's 64 MiB).
    if tile_h is None:
        bytes_per_row = Wp * (depth.dtype.itemsize + tgt_depth.dtype.itemsize
                              + mask.dtype.itemsize + 3 * nmap.dtype.itemsize)
        budget = 28 * 1024 * 1024
        th_fit = max(8, (budget // (2 * bytes_per_row + 10 * 4 * Wp)) // 8 * 8)
        tile_h = int(min(256, th_fit, _round_up(H, 8)))
    TH = max(8, _round_up(int(tile_h), 8))
    Hp = _round_up(H, TH)
    n_tiles = Hp // TH
    r8 = TH // 8
    n_blk8 = Hp // 8

    def pad_hw(x):
        ph, pw = Hp - x.shape[-2], Wp - x.shape[-1]
        if ph == 0 and pw == 0:
            return x
        return jnp.pad(x, [(0, 0)] * (x.ndim - 2) + [(0, ph), (0, pw)])

    dp = pad_hw(depth)        # native dtype; upcast happens in-kernel
    tp = pad_hw(tgt_depth)
    nmp = pad_hw(nmap)
    mp = pad_hw(mask)         # zero padding -> padded pixels masked out

    # Tiny (B,)-sized scalar reciprocals of the focal lengths (SMEM).
    rfx = 1.0 / intrinsics[:, 0, 0].astype(jnp.float32)
    rfy = 1.0 / intrinsics[:, 1, 1].astype(jnp.float32)

    smem_spec = pl.BlockSpec(memory_space=pltpu.MemorySpace.SMEM)
    plane_spec = pl.BlockSpec((1, 1, TH, Wp), lambda b, t: (b, 0, t, 0))
    nmap_spec = pl.BlockSpec((1, 3, TH, Wp), lambda b, t: (b, 0, t, 0))
    # Halo rows: the 8-row block just above / below the current tile (clamped at
    # the image top/bottom; the kernel zeroes the value on boundary tiles).
    top_spec = pl.BlockSpec(
        (1, 1, 8, Wp), lambda b, t: (b, 0, jnp.maximum(t * r8 - 1, 0), 0))
    bot_spec = pl.BlockSpec(
        (1, 1, 8, Wp), lambda b, t: (b, 0, jnp.minimum((t + 1) * r8, n_blk8 - 1), 0))
    part_spec = pl.BlockSpec((1, 1, 8, 128), lambda b, t: (b, t, 0, 0))

    # Generation-aware VMEM limit: raise v5e/v6e's scoped default but never ask
    # for all of v7x's 64 MiB physical VMEM.
    try:
        vmem_cap = pltpu.get_tpu_info().vmem_capacity_bytes
    except Exception:
        vmem_cap = 128 * 1024 * 1024
    vmem_limit = int(min(48 * 1024 * 1024, vmem_cap * 3 // 4))

    kernel = functools.partial(_cons_loss_kernel,
                               cx=float(W) / 2.0, cy=float(H) / 2.0)
    s, c = pl.pallas_call(
        kernel,
        out_shape=(jax.ShapeDtypeStruct((B, n_tiles, 8, 128), jnp.float32),
                   jax.ShapeDtypeStruct((B, n_tiles, 8, 128), jnp.float32)),
        grid=(B, n_tiles),
        in_specs=[smem_spec, smem_spec, plane_spec, plane_spec, nmap_spec,
                  plane_spec, top_spec, bot_spec, top_spec, bot_spec],
        out_specs=(part_spec, part_spec),
        compiler_params=pltpu.CompilerParams(
            dimension_semantics=("parallel", "parallel"),
            vmem_limit_bytes=vmem_limit),
    )(rfx, rfy, dp, tp, nmp, mp, dp, dp, tp, tp)
    # TODO(synk): guard against an all-masked batch (count == 0 -> NaN), which
    # matches the PyTorch module's behavior but may be undesirable in training.
    return jnp.sum(s[:, :, 0, 0]) / jnp.sum(c[:, :, 0, 0])


def cons_loss_reference(depth, tgt_depth, nmap, intrinsics, mask):
    """Pure-JAX reference mirroring the PyTorch module."""
    B, _, H, W = depth.shape
    kx = jnp.array([[1/8, 0, -1/8], [1/4, 0, -1/4], [1/8, 0, -1/8]], jnp.float32)
    ky = jnp.array([[1/8, 1/4, 1/8], [0, 0, 0], [-1/8, -1/4, -1/8]], jnp.float32)
    kern = jnp.stack([kx, ky])[:, None]            # (2,1,3,3)

    def grad1(x):
        return -jax.lax.conv_general_dilated(
            x, kern, (1, 1), ((1, 1), (1, 1)),
            dimension_numbers=("NCHW", "OIHW", "NCHW"))

    tg1 = grad1(tgt_depth) * 100.0
    g1 = grad1(depth) * 100.0

    nz = nmap[:, 2]
    nz = jnp.where(nz == 0.0, 1e-10, nz)
    ng = nmap[:, :2] / nz[:, None]
    fx = intrinsics[:, 0, 0].reshape(B, 1, 1)
    fy = intrinsics[:, 1, 1].reshape(B, 1, 1)
    f = jnp.stack([fx, fy], axis=1)                # (B,2,1,1)
    gd = -ng * depth / f
    px = (jnp.arange(W, dtype=jnp.float32) - W / 2).reshape(1, 1, W)
    py = (jnp.arange(H, dtype=jnp.float32) - H / 2).reshape(1, H, 1)
    denom = 1.0 + px * ng[:, 0] / fx + py * ng[:, 1] / fy
    denom = jnp.where(denom == 0.0, 1e-10, denom)
    g2 = gd / denom[:, None] * 100.0

    gm = jnp.broadcast_to(mask.astype(bool), (B, 2, H, W))
    gm = (jnp.abs(tg1) < 1.0) & gm & (jnp.abs(g1) < 5.0) & (jnp.abs(g2) < 5.0)
    diff = g1 - g2
    ad = jnp.abs(diff)
    l = jnp.where(ad < 1.0, 0.5 * diff * diff, ad - 0.5)
    return jnp.sum(jnp.where(gm, l, 0.0)) / jnp.sum(gm)


if __name__ == "__main__":
    B, H, W = 2, 16, 16
    key = jax.random.PRNGKey(0)
    k1, k2, k3, k4, k5 = jax.random.split(key, 5)

    # Smooth depth / near-frontal normals so a meaningful fraction of pixels
    # survives the gradient-magnitude masking.
    depth = 1.0 + 0.05 * jax.random.normal(k1, (B, 1, H, W), jnp.float32)
    tgt_depth = 1.0 + 0.05 * jax.random.normal(k2, (B, 1, H, W), jnp.float32)
    nmap_xy = 0.02 * jax.random.normal(k3, (B, 2, H, W), jnp.float32)
    nmap_z = 1.0 + 0.02 * jax.random.normal(k4, (B, 1, H, W), jnp.float32)
    nmap = jnp.concatenate([nmap_xy, nmap_z], axis=1)          # (B,3,H,W)
    intrinsics = jnp.broadcast_to(
        jnp.array([[100.0, 0.0, W / 2],
                   [0.0, 100.0, H / 2],
                   [0.0, 0.0, 1.0]], jnp.float32), (B, 3, 3))
    mask = (jax.random.uniform(k5, (B, 1, H, W)) > 0.3).astype(jnp.float32)

    # tile_h=8 -> two H-tiles per image: exercises the halo-row stitching path.
    loss = jax.block_until_ready(
        cons_loss(depth, tgt_depth, nmap, intrinsics, mask, tile_h=8))
    ref = jax.block_until_ready(
        cons_loss_reference(depth, tgt_depth, nmap, intrinsics, mask))
    np.testing.assert_allclose(np.asarray(loss), np.asarray(ref),
                               rtol=1e-3, atol=1e-5)
    print("KERNEL_OK")
</pallas_src>

<mosaic_0001>
module attributes {stable_mosaic.version = 11 : i64} {
  func.func @_cons_loss_kernel(%arg0: i32, %arg1: i32, %arg2: memref<2xf32, #tpu.memory_space<smem>>, %arg3: memref<2xf32, #tpu.memory_space<smem>>, %arg4: memref<1x1x8x128xf32, #tpu.memory_space<vmem>>, %arg5: memref<1x1x8x128xf32, #tpu.memory_space<vmem>>, %arg6: memref<1x3x8x128xf32, #tpu.memory_space<vmem>>, %arg7: memref<1x1x8x128xf32, #tpu.memory_space<vmem>>, %arg8: memref<1x1x8x128xf32, #tpu.memory_space<vmem>>, %arg9: memref<1x1x8x128xf32, #tpu.memory_space<vmem>>, %arg10: memref<1x1x8x128xf32, #tpu.memory_space<vmem>>, %arg11: memref<1x1x8x128xf32, #tpu.memory_space<vmem>>, %arg12: memref<1x1x8x128xf32, #tpu.memory_space<vmem>>, %arg13: memref<1x1x8x128xf32, #tpu.memory_space<vmem>>) attributes {dimension_semantics = [#tpu.dimension_semantics<parallel>, #tpu.dimension_semantics<parallel>], iteration_bounds = array<i64: 2, 2>, scalar_prefetch = 0 : i64, scratch_operands = 0 : i64, tpu.core_type = #tpu.core_type<tc>, window_params = [{transform_indices = @transform_0, window_bounds = array<i64: 2>}, {transform_indices = @transform_1, window_bounds = array<i64: 2>}, {transform_indices = @transform_2, window_bounds = array<i64: 1, 1, 8, 128>}, {transform_indices = @transform_3, window_bounds = array<i64: 1, 1, 8, 128>}, {transform_indices = @transform_4, window_bounds = array<i64: 1, 3, 8, 128>}, {transform_indices = @transform_5, window_bounds = array<i64: 1, 1, 8, 128>}, {transform_indices = @transform_6, window_bounds = array<i64: 1, 1, 8, 128>}, {transform_indices = @transform_7, window_bounds = array<i64: 1, 1, 8, 128>}, {transform_indices = @transform_8, window_bounds = array<i64: 1, 1, 8, 128>}, {transform_indices = @transform_9, window_bounds = array<i64: 1, 1, 8, 128>}, {transform_indices = @transform_10, window_bounds = array<i64: 1, 1, 8, 128>}, {transform_indices = @transform_11, window_bounds = array<i64: 1, 1, 8, 128>}]} {
    %0 = tpu.iota {dimensions = array<i32: 0>} : vector<8x128xi32>
    %1 = tpu.iota {dimensions = array<i32: 1>} : vector<8x128xi32>
    %c0_i32 = arith.constant 0 : i32
    %2 = vector.broadcast %c0_i32 : i32 to vector<8x128xi32>
    %3 = arith.cmpi sgt, %1, %2 : vector<8x128xi32>
    %c127_i32 = arith.constant 127 : i32
    %4 = vector.broadcast %c127_i32 : i32 to vector<8x128xi32>
    %5 = arith.cmpi slt, %1, %4 : vector<8x128xi32>
    %c0_i32_0 = arith.constant 0 : i32
    %6 = vector.broadcast %c0_i32_0 : i32 to vector<8x128xi32>
    %7 = arith.cmpi eq, %0, %6 : vector<8x128xi32>
    %c7_i32 = arith.constant 7 : i32
    %8 = vector.broadcast %c7_i32 : i32 to vector<8x128xi32>
    %9 = arith.cmpi eq, %0, %8 : vector<8x128xi32>
    %10 = tpu.iota {dimensions = array<i32: 1>} : vector<1x128xi32>
    %c0_i32_1 = arith.constant 0 : i32
    %11 = vector.broadcast %c0_i32_1 : i32 to vector<1x128xi32>
    %12 = arith.cmpi sgt, %10, %11 : vector<1x128xi32>
    %c127_i32_2 = arith.constant 127 : i32
    %13 = vector.broadcast %c127_i32_2 : i32 to vector<1x128xi32>
    %14 = arith.cmpi slt, %10, %13 : vector<1x128xi32>
    %c0 = arith.constant 0 : index
    %c0_3 = arith.constant 0 : index
    %c0_4 = arith.constant 0 : index
    %c0_5 = arith.constant 0 : index
    %15 = vector.load %arg4[%c0, %c0_3, %c0_4, %c0_5] : memref<1x1x8x128xf32, #tpu.memory_space<vmem>>, vector<1x1x8x128xf32>
    %16 = vector.shape_cast %15 : vector<1x1x8x128xf32> to vector<8x128xf32>
    %c0_6 = arith.constant 0 : index
    %c0_7 = arith.constant 0 : index
    %c0_8 = arith.constant 0 : index
    %c0_9 = arith.constant 0 : index
    %17 = vector.load %arg5[%c0_6, %c0_7, %c0_8, %c0_9] : memref<1x1x8x128xf32, #tpu.memory_space<vmem>>, vector<1x1x8x128xf32>
    %18 = vector.shape_cast %17 : vector<1x1x8x128xf32> to vector<8x128xf32>
    %c0_10 = arith.constant 0 : index
    %c0_11 = arith.constant 0 : index
    %c0_12 = arith.constant 0 : index
    %c0_13 = arith.constant 0 : index
    %19 = vector.load %arg7[%c0_10, %c0_11, %c0_12, %c0_13] : memref<1x1x8x128xf32, #tpu.memory_space<vmem>>, vector<1x1x8x128xf32>
    %20 = vector.shape_cast %19 : vector<1x1x8x128xf32> to vector<8x128xf32>
    %cst = arith.constant 0.000000e+00 : f32
    %21 = vector.broadcast %cst : f32 to vector<8x128xf32>
    %22 = arith.cmpf one, %20, %21 : vector<8x128xf32>
    %c0_14 = arith.constant 0 : index
    %c0_15 = arith.constant 0 : index
    %c0_16 = arith.constant 0 : index
    %c0_17 = arith.constant 0 : index
    %23 = vector.load %arg8[%c0_14, %c0_15, %c0_16, %c0_17] : memref<1x1x8x128xf32, #tpu.memory_space<vmem>>, vector<1x1x8x128xf32>
    %24 = vector.shape_cast %23 : vector<1x1x8x128xf32> to vector<8x128xf32>
    %25 = vector.extract_strided_slice %24 {offsets = [7, 0], sizes = [1, 128], strides = [1, 1]} : vector<8x128xf32> to vector<1x128xf32>
    %c0_18 = arith.constant 0 : index
    %c0_19 = arith.constant 0 : index
    %c0_20 = arith.constant 0 : index
    %c0_21 = arith.constant 0 : index
    %26 = vector.load %arg9[%c0_18, %c0_19, %c0_20, %c0_21] : memref<1x1x8x128xf32, #tpu.memory_space<vmem>>, vector<1x1x8x128xf32>
    %27 = vector.shape_cast %26 : vector<1x1x8x128xf32> to vector<8x128xf32>
    %28 = vector.extract_strided_slice %27 {offsets = [0, 0], sizes = [1, 128], strides = [1, 1]} : vector<8x128xf32> to vector<1x128xf32>
    %c0_i32_22 = arith.constant 0 : i32
    %29 = arith.cmpi sgt, %arg1, %c0_i32_22 : i32
    %cst_23 = arith.constant 0.000000e+00 : f32
    %30 = vector.broadcast %cst_23 : f32 to vector<1x128xf32>
    %31 = arith.select %29, %25, %30 : vector<1x128xf32>
    %c1_i32 = arith.constant 1 : i32
    %32 = arith.cmpi slt, %arg1, %c1_i32 : i32
    %cst_24 = arith.constant 0.000000e+00 : f32
    %33 = vector.broadcast %cst_24 : f32 to vector<1x128xf32>
    %34 = arith.select %32, %28, %33 : vector<1x128xf32>
    %c0_25 = arith.constant 0 : index
    %c0_26 = arith.constant 0 : index
    %c0_27 = arith.constant 0 : index
    %c0_28 = arith.constant 0 : index
    %35 = vector.load %arg10[%c0_25, %c0_26, %c0_27, %c0_28] : memref<1x1x8x128xf32, #tpu.memory_space<vmem>>, vector<1x1x8x128xf32>
    %36 = vector.shape_cast %35 : vector<1x1x8x128xf32> to vector<8x128xf32>
    %37 = vector.extract_strided_slice %36 {offsets = [7, 0], sizes = [1, 128], strides = [1, 1]} : vector<8x128xf32> to vector<1x128xf32>
    %c0_29 = arith.constant 0 : index
    %c0_30 = arith.constant 0 : index
    %c0_31 = arith.constant 0 : index
    %c0_32 = arith.constant 0 : index
    %38 = vector.load %arg11[%c0_29, %c0_30, %c0_31, %c0_32] : memref<1x1x8x128xf32, #tpu.memory_space<vmem>>, vector<1x1x8x128xf32>
    %39 = vector.shape_cast %38 : vector<1x1x8x128xf32> to vector<8x128xf32>
    %40 = vector.extract_strided_slice %39 {offsets = [0, 0], sizes = [1, 128], strides = [1, 1]} : vector<8x128xf32> to vector<1x128xf32>
    %c0_i32_33 = arith.constant 0 : i32
    %41 = arith.cmpi sgt, %arg1, %c0_i32_33 : i32
    %cst_34 = arith.constant 0.000000e+00 : f32
    %42 = vector.broadcast %cst_34 : f32 to vector<1x128xf32>
    %43 = arith.select %41, %37, %42 : vector<1x128xf32>
    %c1_i32_35 = arith.constant 1 : i32
    %44 = arith.cmpi slt, %arg1, %c1_i32_35 : i32
    %cst_36 = arith.constant 0.000000e+00 : f32
    %45 = vector.broadcast %cst_36 : f32 to vector<1x128xf32>
    %46 = arith.select %44, %40, %45 : vector<1x128xf32>
    %c0_37 = arith.constant 0 : index
    %c2 = arith.constant 2 : index
    %c0_38 = arith.constant 0 : index
    %c0_39 = arith.constant 0 : index
    %47 = vector.load %arg6[%c0_37, %c2, %c0_38, %c0_39] : memref<1x3x8x128xf32, #tpu.memory_space<vmem>>, vector<1x1x8x128xf32>
    %48 = vector.shape_cast %47 : vector<1x1x8x128xf32> to vector<8x128xf32>
    %cst_40 = arith.constant 0.000000e+00 : f32
    %49 = vector.broadcast %cst_40 : f32 to vector<8x128xf32>
    %50 = arith.cmpf oeq, %48, %49 : vector<8x128xf32>
    %cst_41 = arith.constant 1.000000e-10 : f32
    %51 = vector.broadcast %cst_41 : f32 to vector<8x128xf32>
    %52 = arith.select %50, %51, %48 : vector<8x128xi1>, vector<8x128xf32>
    %53 = tpu.reciprocal %52 {approx = true} : vector<8x128xf32> -> vector<8x128xf32>
    %c0_42 = arith.constant 0 : index
    %c0_43 = arith.constant 0 : index
    %c0_44 = arith.constant 0 : index
    %c0_45 = arith.constant 0 : index
    %54 = vector.load %arg6[%c0_42, %c0_43, %c0_44, %c0_45] : memref<1x3x8x128xf32, #tpu.memory_space<vmem>>, vector<1x1x8x128xf32>
    %55 = vector.shape_cast %54 : vector<1x1x8x128xf32> to vector<8x128xf32>
    %56 = arith.mulf %55, %53 : vector<8x128xf32>
    %c0_46 = arith.constant 0 : index
    %c1 = arith.constant 1 : index
    %c0_47 = arith.constant 0 : index
    %c0_48 = arith.constant 0 : index
    %57 = vector.load %arg6[%c0_46, %c1, %c0_47, %c0_48] : memref<1x3x8x128xf32, #tpu.memory_space<vmem>>, vector<1x1x8x128xf32>
    %58 = vector.shape_cast %57 : vector<1x1x8x128xf32> to vector<8x128xf32>
    %59 = arith.mulf %58, %53 : vector<8x128xf32>
    %60 = arith.index_cast %arg0 : i32 to index
    %61 = memref.load %arg2[%60] : memref<2xf32, #tpu.memory_space<smem>>
    %62 = arith.index_cast %arg0 : i32 to index
    %63 = memref.load %arg3[%62] : memref<2xf32, #tpu.memory_space<smem>>
    %64 = arith.sitofp %1 : vector<8x128xi32> to vector<8x128xf32>
    %cst_49 = arith.constant 8.000000e+00 : f32
    %65 = vector.broadcast %cst_49 : f32 to vector<8x128xf32>
    %66 = arith.subf %64, %65 : vector<8x128xf32>
    %c8_i32 = arith.constant 8 : i32
    %67 = arith.muli %arg1, %c8_i32 : i32
    %68 = vector.broadcast %67 : i32 to vector<8x128xi32>
    %69 = arith.addi %0, %68 : vector<8x128xi32>
    %70 = arith.sitofp %69 : vector<8x128xi32> to vector<8x128xf32>
    %cst_50 = arith.constant 8.000000e+00 : f32
    %71 = vector.broadcast %cst_50 : f32 to vector<8x128xf32>
    %72 = arith.subf %70, %71 : vector<8x128xf32>
    %73 = vector.broadcast %61 : f32 to vector<8x128xf32>
    %74 = arith.mulf %56, %73 : vector<8x128xf32>
    %75 = arith.mulf %66, %74 : vector<8x128xf32>
    %cst_51 = arith.constant 1.000000e+00 : f32
    %76 = vector.broadcast %cst_51 : f32 to vector<8x128xf32>
    %77 = arith.addf %76, %75 : vector<8x128xf32>
    %78 = vector.broadcast %63 : f32 to vector<8x128xf32>
    %79 = arith.mulf %59, %78 : vector<8x128xf32>
    %80 = arith.mulf %72, %79 : vector<8x128xf32>
    %81 = arith.addf %77, %80 : vector<8x128xf32>
    %cst_52 = arith.constant 0.000000e+00 : f32
    %82 = vector.broadcast %cst_52 : f32 to vector<8x128xf32>
    %83 = arith.cmpf oeq, %81, %82 : vector<8x128xf32>
    %cst_53 = arith.constant 1.000000e-10 : f32
    %84 = vector.broadcast %cst_53 : f32 to vector<8x128xf32>
    %85 = arith.select %83, %84, %81 : vector<8x128xi1>, vector<8x128xf32>
    %86 = tpu.reciprocal %85 {approx = true} : vector<8x128xf32> -> vector<8x128xf32>
    %87 = arith.mulf %16, %86 : vector<8x128xf32>
    %c1_i32_54 = arith.constant 1 : i32
    %88 = tpu.dynamic_rotate %16 by %c1_i32_54 dim 0 : vector<8x128xf32>, i32 -> vector<8x128xf32>
    %89 = vector.shape_cast %31 : vector<1x128xf32> to vector<1x128xf32>
    %90 = vector.broadcast %89 : vector<1x128xf32> to vector<8x128xf32>
    %91 = arith.select %7, %90, %88 : vector<8x128xi1>, vector<8x128xf32>
    %c7_i32_55 = arith.constant 7 : i32
    %92 = tpu.dynamic_rotate %16 by %c7_i32_55 dim 0 : vector<8x128xf32>, i32 -> vector<8x128xf32>
    %93 = vector.shape_cast %34 : vector<1x128xf32> to vector<1x128xf32>
    %94 = vector.broadcast %93 : vector<1x128xf32> to vector<8x128xf32>
    %95 = arith.select %9, %94, %92 : vector<8x128xi1>, vector<8x128xf32>
    %96 = arith.addf %91, %95 : vector<8x128xf32>
    %cst_56 = arith.constant 1.250000e-01 : f32
    %97 = vector.broadcast %cst_56 : f32 to vector<8x128xf32>
    %98 = arith.mulf %97, %96 : vector<8x128xf32>
    %cst_57 = arith.constant 2.500000e-01 : f32
    %99 = vector.broadcast %cst_57 : f32 to vector<8x128xf32>
    %100 = arith.mulf %99, %16 : vector<8x128xf32>
    %101 = arith.addf %98, %100 : vector<8x128xf32>
    %c127_i32_58 = arith.constant 127 : i32
    %102 = tpu.dynamic_rotate %101 by %c127_i32_58 dim 1 : vector<8x128xf32>, i32 -> vector<8x128xf32>
    %cst_59 = arith.constant 0.000000e+00 : f32
    %103 = vector.broadcast %cst_59 : f32 to vector<8x128xf32>
    %104 = arith.select %5, %102, %103 : vector<8x128xi1>, vector<8x128xf32>
    %c1_i32_60 = arith.constant 1 : i32
    %105 = tpu.dynamic_rotate %101 by %c1_i32_60 dim 1 : vector<8x128xf32>, i32 -> vector<8x128xf32>
    %cst_61 = arith.constant 0.000000e+00 : f32
    %106 = vector.broadcast %cst_61 : f32 to vector<8x128xf32>
    %107 = arith.select %3, %105, %106 : vector<8x128xi1>, vector<8x128xf32>
    %108 = arith.subf %104, %107 : vector<8x128xf32>
    %cst_62 = arith.constant 1.000000e+02 : f32
    %109 = vector.broadcast %cst_62 : f32 to vector<8x128xf32>
    %110 = arith.mulf %109, %108 : vector<8x128xf32>
    %cst_63 = arith.constant -1.000000e+02 : f32
    %111 = arith.mulf %cst_63, %61 : f32
    %112 = vector.broadcast %111 : f32 to vector<8x128xf32>
    %113 = arith.mulf %112, %56 : vector<8x128xf32>
    %114 = arith.mulf %113, %87 : vector<8x128xf32>
    %c1_i32_64 = arith.constant 1 : i32
    %115 = tpu.dynamic_rotate %18 by %c1_i32_64 dim 0 : vector<8x128xf32>, i32 -> vector<8x128xf32>
    %116 = vector.shape_cast %43 : vector<1x128xf32> to vector<1x128xf32>
    %117 = vector.broadcast %116 : vector<1x128xf32> to vector<8x128xf32>
    %118 = arith.select %7, %117, %115 : vector<8x128xi1>, vector<8x128xf32>
    %c7_i32_65 = arith.constant 7 : i32
    %119 = tpu.dynamic_rotate %18 by %c7_i32_65 dim 0 : vector<8x128xf32>, i32 -> vector<8x128xf32>
    %120 = vector.shape_cast %46 : vector<1x128xf32> to vector<1x128xf32>
    %121 = vector.broadcast %120 : vector<1x128xf32> to vector<8x128xf32>
    %122 = arith.select %9, %121, %119 : vector<8x128xi1>, vector<8x128xf32>
    %123 = arith.addf %118, %122 : vector<8x128xf32>
    %cst_66 = arith.constant 1.250000e-01 : f32
    %124 = vector.broadcast %cst_66 : f32 to vector<8x128xf32>
    %125 = arith.mulf %124, %123 : vector<8x128xf32>
    %cst_67 = arith.constant 2.500000e-01 : f32
    %126 = vector.broadcast %cst_67 : f32 to vector<8x128xf32>
    %127 = arith.mulf %126, %18 : vector<8x128xf32>
    %128 = arith.addf %125, %127 : vector<8x128xf32>
    %c127_i32_68 = arith.constant 127 : i32
    %129 = tpu.dynamic_rotate %128 by %c127_i32_68 dim 1 : vector<8x128xf32>, i32 -> vector<8x128xf32>
    %cst_69 = arith.constant 0.000000e+00 : f32
    %130 = vector.broadcast %cst_69 : f32 to vector<8x128xf32>
    %131 = arith.select %5, %129, %130 : vector<8x128xi1>, vector<8x128xf32>
    %c1_i32_70 = arith.constant 1 : i32
    %132 = tpu.dynamic_rotate %128 by %c1_i32_70 dim 1 : vector<8x128xf32>, i32 -> vector<8x128xf32>
    %cst_71 = arith.constant 0.000000e+00 : f32
    %133 = vector.broadcast %cst_71 : f32 to vector<8x128xf32>
    %134 = arith.select %3, %132, %133 : vector<8x128xi1>, vector<8x128xf32>
    %135 = arith.subf %131, %134 : vector<8x128xf32>
    %cst_72 = arith.constant 1.000000e+02 : f32
    %136 = vector.broadcast %cst_72 : f32 to vector<8x128xf32>
    %137 = arith.mulf %136, %135 : vector<8x128xf32>
    %138 = math.absf %137 : vector<8x128xf32>
    %cst_73 = arith.constant 1.000000e+00 : f32
    %139 = vector.broadcast %cst_73 : f32 to vector<8x128xf32>
    %140 = arith.cmpf olt, %138, %139 : vector<8x128xf32>
    %141 = arith.andi %140, %22 : vector<8x128xi1>
    %142 = math.absf %110 : vector<8x128xf32>
    %cst_74 = arith.constant 5.000000e+00 : f32
    %143 = vector.broadcast %cst_74 : f32 to vector<8x128xf32>
    %144 = arith.cmpf olt, %142, %143 : vector<8x128xf32>
    %145 = arith.andi %141, %144 : vector<8x128xi1>
    %146 = math.absf %114 : vector<8x128xf32>
    %cst_75 = arith.constant 5.000000e+00 : f32
    %147 = vector.broadcast %cst_75 : f32 to vector<8x128xf32>
    %148 = arith.cmpf olt, %146, %147 : vector<8x128xf32>
    %149 = arith.andi %145, %148 : vector<8x128xi1>
    %150 = arith.subf %110, %114 : vector<8x128xf32>
    %151 = math.absf %150 : vector<8x128xf32>
    %cst_76 = arith.constant 1.000000e+00 : f32
    %152 = vector.broadcast %cst_76 : f32 to vector<8x128xf32>
    %153 = arith.cmpf olt, %151, %152 : vector<8x128xf32>
    %cst_77 = arith.constant 5.000000e-01 : f32
    %154 = vector.broadcast %cst_77 : f32 to vector<8x128xf32>
    %155 = arith.mulf %154, %150 : vector<8x128xf32>
    %156 = arith.mulf %155, %150 : vector<8x128xf32>
    %cst_78 = arith.constant 5.000000e-01 : f32
    %157 = vector.broadcast %cst_78 : f32 to vector<8x128xf32>
    %158 = arith.subf %151, %157 : vector<8x128xf32>
    %159 = arith.select %153, %156, %158 : vector<8x128xi1>, vector<8x128xf32>
    %cst_79 = arith.constant 0.000000e+00 : f32
    %160 = vector.broadcast %cst_79 : f32 to vector<8x128xf32>
    %161 = arith.select %149, %159, %160 : vector<8x128xi1>, vector<8x128xf32>
    %162 = vector.shape_cast %161 : vector<8x128xf32> to vector<1x8x128xf32>
    %cst_80 = arith.constant dense<0.000000e+00> : vector<1xf32>
    %163 = vector.multi_reduction <add>, %162, %cst_80 [1, 2] : vector<1x8x128xf32> to vector<1xf32>
    %164 = vector.shape_cast %163 : vector<1xf32> to vector<1x1x1xf32>
    %165 = vector.extract %164[0, 0, 0] : f32 from vector<1x1x1xf32>
    %166 = arith.extui %149 : vector<8x128xi1> to vector<8x128xi32>
    %167 = arith.sitofp %166 : vector<8x128xi32> to vector<8x128xf32>
    %168 = vector.shape_cast %167 : vector<8x128xf32> to vector<1x8x128xf32>
    %cst_81 = arith.constant dense<0.000000e+00> : vector<1xf32>
    %169 = vector.multi_reduction <add>, %168, %cst_81 [1, 2] : vector<1x8x128xf32> to vector<1xf32>
    %170 = vector.shape_cast %169 : vector<1xf32> to vector<1x1x1xf32>
    %171 = vector.extract %170[0, 0, 0] : f32 from vector<1x1x1xf32>
    %c1_i32_82 = arith.constant 1 : i32
    %172 = tpu.dynamic_rotate %16 by %c1_i32_82 dim 1 : vector<8x128xf32>, i32 -> vector<8x128xf32>
    %cst_83 = arith.constant 0.000000e+00 : f32
    %173 = vector.broadcast %cst_83 : f32 to vector<8x128xf32>
    %174 = arith.select %3, %172, %173 : vector<8x128xi1>, vector<8x128xf32>
    %c127_i32_84 = arith.constant 127 : i32
    %175 = tpu.dynamic_rotate %16 by %c127_i32_84 dim 1 : vector<8x128xf32>, i32 -> vector<8x128xf32>
    %cst_85 = arith.constant 0.000000e+00 : f32
    %176 = vector.broadcast %cst_85 : f32 to vector<8x128xf32>
    %177 = arith.select %5, %175, %176 : vector<8x128xi1>, vector<8x128xf32>
    %178 = arith.addf %174, %177 : vector<8x128xf32>
    %cst_86 = arith.constant 1.250000e-01 : f32
    %179 = vector.broadcast %cst_86 : f32 to vector<8x128xf32>
    %180 = arith.mulf %179, %178 : vector<8x128xf32>
    %cst_87 = arith.constant 2.500000e-01 : f32
    %181 = vector.broadcast %cst_87 : f32 to vector<8x128xf32>
    %182 = arith.mulf %181, %16 : vector<8x128xf32>
    %183 = arith.addf %180, %182 : vector<8x128xf32>
    %c1_i32_88 = arith.constant 1 : i32
    %184 = tpu.dynamic_rotate %31 by %c1_i32_88 dim 1 : vector<1x128xf32>, i32 -> vector<1x128xf32>
    %cst_89 = arith.constant 0.000000e+00 : f32
    %185 = vector.broadcast %cst_89 : f32 to vector<1x128xf32>
    %186 = arith.select %12, %184, %185 : vector<1x128xi1>, vector<1x128xf32>
    %c127_i32_90 = arith.constant 127 : i32
    %187 = tpu.dynamic_rotate %31 by %c127_i32_90 dim 1 : vector<1x128xf32>, i32 -> vector<1x128xf32>
    %cst_91 = arith.constant 0.000000e+00 : f32
    %188 = vector.broadcast %cst_91 : f32 to vector<1x128xf32>
    %189 = arith.select %14, %187, %188 : vector<1x128xi1>, vector<1x128xf32>
    %190 = arith.addf %186, %189 : vector<1x128xf32>
    %cst_92 = arith.constant 1.250000e-01 : f32
    %191 = vector.broadcast %cst_92 : f32 to vector<1x128xf32>
    %192 = arith.mulf %191, %190 : vector<1x128xf32>
    %cst_93 = arith.constant 2.500000e-01 : f32
    %193 = vector.broadcast %cst_93 : f32 to vector<1x128xf32>
    %194 = arith.mulf %193, %31 : vector<1x128xf32>
    %195 = arith.addf %192, %194 : vector<1x128xf32>
    %c1_i32_94 = arith.constant 1 : i32
    %196 = tpu.dynamic_rotate %34 by %c1_i32_94 dim 1 : vector<1x128xf32>, i32 -> vector<1x128xf32>
    %cst_95 = arith.constant 0.000000e+00 : f32
    %197 = vector.broadcast %cst_95 : f32 to vector<1x128xf32>
    %198 = arith.select %12, %196, %197 : vector<1x128xi1>, vector<1x128xf32>
    %c127_i32_96 = arith.constant 127 : i32
    %199 = tpu.dynamic_rotate %34 by %c127_i32_96 dim 1 : vector<1x128xf32>, i32 -> vector<1x128xf32>
    %cst_97 = arith.constant 0.000000e+00 : f32
    %200 = vector.broadcast %cst_97 : f32 to vector<1x128xf32>
    %201 = arith.select %14, %199, %200 : vector<1x128xi1>, vector<1x128xf32>
    %202 = arith.addf %198, %201 : vector<1x128xf32>
    %cst_98 = arith.constant 1.250000e-01 : f32
    %203 = vector.broadcast %cst_98 : f32 to vector<1x128xf32>
    %204 = arith.mulf %203, %202 : vector<1x128xf32>
    %cst_99 = arith.constant 2.500000e-01 : f32
    %205 = vector.broadcast %cst_99 : f32 to vector<1x128xf32>
    %206 = arith.mulf %205, %34 : vector<1x128xf32>
    %207 = arith.addf %204, %206 : vector<1x128xf32>
    %c7_i32_100 = arith.constant 7 : i32
    %208 = tpu.dynamic_rotate %183 by %c7_i32_100 dim 0 : vector<8x128xf32>, i32 -> vector<8x128xf32>
    %209 = vector.shape_cast %207 : vector<1x128xf32> to vector<1x128xf32>
    %210 = vector.broadcast %209 : vector<1x128xf32> to vector<8x128xf32>
    %211 = arith.select %9, %210, %208 : vector<8x128xi1>, vector<8x128xf32>
    %c1_i32_101 = arith.constant 1 : i32
    %212 = tpu.dynamic_rotate %183 by %c1_i32_101 dim 0 : vector<8x128xf32>, i32 -> vector<8x128xf32>
    %213 = vector.shape_cast %195 : vector<1x128xf32> to vector<1x128xf32>
    %214 = vector.broadcast %213 : vector<1x128xf32> to vector<8x128xf32>
    %215 = arith.select %7, %214, %212 : vector<8x128xi1>, vector<8x128xf32>
    %216 = arith.subf %211, %215 : vector<8x128xf32>
    %cst_102 = arith.constant 1.000000e+02 : f32
    %217 = vector.broadcast %cst_102 : f32 to vector<8x128xf32>
    %218 = arith.mulf %217, %216 : vector<8x128xf32>
    %cst_103 = arith.constant -1.000000e+02 : f32
    %219 = arith.mulf %cst_103, %63 : f32
    %220 = vector.broadcast %219 : f32 to vector<8x128xf32>
    %221 = arith.mulf %220, %59 : vector<8x128xf32>
    %222 = arith.mulf %221, %87 : vector<8x128xf32>
    %c1_i32_104 = arith.constant 1 : i32
    %223 = tpu.dynamic_rotate %18 by %c1_i32_104 dim 1 : vector<8x128xf32>, i32 -> vector<8x128xf32>
    %cst_105 = arith.constant 0.000000e+00 : f32
    %224 = vector.broadcast %cst_105 : f32 to vector<8x128xf32>
    %225 = arith.select %3, %223, %224 : vector<8x128xi1>, vector<8x128xf32>
    %c127_i32_106 = arith.constant 127 : i32
    %226 = tpu.dynamic_rotate %18 by %c127_i32_106 dim 1 : vector<8x128xf32>, i32 -> vector<8x128xf32>
    %cst_107 = arith.constant 0.000000e+00 : f32
    %227 = vector.broadcast %cst_107 : f32 to vector<8x128xf32>
    %228 = arith.select %5, %226, %227 : vector<8x128xi1>, vector<8x128xf32>
    %229 = arith.addf %225, %228 : vector<8x128xf32>
    %cst_108 = arith.constant 1.250000e-01 : f32
    %230 = vector.broadcast %cst_108 : f32 to vector<8x128xf32>
    %231 = arith.mulf %230, %229 : vector<8x128xf32>
    %cst_109 = arith.constant 2.500000e-01 : f32
    %232 = vector.broadcast %cst_109 : f32 to vector<8x128xf32>
    %233 = arith.mulf %232, %18 : vector<8x128xf32>
    %234 = arith.addf %231, %233 : vector<8x128xf32>
    %c1_i32_110 = arith.constant 1 : i32
    %235 = tpu.dynamic_rotate %43 by %c1_i32_110 dim 1 : vector<1x128xf32>, i32 -> vector<1x128xf32>
    %cst_111 = arith.constant 0.000000e+00 : f32
    %236 = vector.broadcast %cst_111 : f32 to vector<1x128xf32>
    %237 = arith.select %12, %235, %236 : vector<1x128xi1>, vector<1x128xf32>
    %c127_i32_112 = arith.constant 127 : i32
    %238 = tpu.dynamic_rotate %43 by %c127_i32_112 dim 1 : vector<1x128xf32>, i32 -> vector<1x128xf32>
    %cst_113 = arith.constant 0.000000e+00 : f32
    %239 = vector.broadcast %cst_113 : f32 to vector<1x128xf32>
    %240 = arith.select %14, %238, %239 : vector<1x128xi1>, vector<1x128xf32>
    %241 = arith.addf %237, %240 : vector<1x128xf32>
    %cst_114 = arith.constant 1.250000e-01 : f32
    %242 = vector.broadcast %cst_114 : f32 to vector<1x128xf32>
    %243 = arith.mulf %242, %241 : vector<1x128xf32>
    %cst_115 = arith.constant 2.500000e-01 : f32
    %244 = vector.broadcast %cst_115 : f32 to vector<1x128xf32>
    %245 = arith.mulf %244, %43 : vector<1x128xf32>
    %246 = arith.addf %243, %245 : vector<1x128xf32>
    %c1_i32_116 = arith.constant 1 : i32
    %247 = tpu.dynamic_rotate %46 by %c1_i32_116 dim 1 : vector<1x128xf32>, i32 -> vector<1x128xf32>
    %cst_117 = arith.constant 0.000000e+00 : f32
    %248 = vector.broadcast %cst_117 : f32 to vector<1x128xf32>
    %249 = arith.select %12, %247, %248 : vector<1x128xi1>, vector<1x128xf32>
    %c127_i32_118 = arith.constant 127 : i32
    %250 = tpu.dynamic_rotate %46 by %c127_i32_118 dim 1 : vector<1x128xf32>, i32 -> vector<1x128xf32>
    %cst_119 = arith.constant 0.000000e+00 : f32
    %251 = vector.broadcast %cst_119 : f32 to vector<1x128xf32>
    %252 = arith.select %14, %250, %251 : vector<1x128xi1>, vector<1x128xf32>
    %253 = arith.addf %249, %252 : vector<1x128xf32>
    %cst_120 = arith.constant 1.250000e-01 : f32
    %254 = vector.broadcast %cst_120 : f32 to vector<1x128xf32>
    %255 = arith.mulf %254, %253 : vector<1x128xf32>
    %cst_121 = arith.constant 2.500000e-01 : f32
    %256 = vector.broadcast %cst_121 : f32 to vector<1x128xf32>
    %257 = arith.mulf %256, %46 : vector<1x128xf32>
    %258 = arith.addf %255, %257 : vector<1x128xf32>
    %c7_i32_122 = arith.constant 7 : i32
    %259 = tpu.dynamic_rotate %234 by %c7_i32_122 dim 0 : vector<8x128xf32>, i32 -> vector<8x128xf32>
    %260 = vector.shape_cast %258 : vector<1x128xf32> to vector<1x128xf32>
    %261 = vector.broadcast %260 : vector<1x128xf32> to vector<8x128xf32>
    %262 = arith.select %9, %261, %259 : vector<8x128xi1>, vector<8x128xf32>
    %c1_i32_123 = arith.constant 1 : i32
    %263 = tpu.dynamic_rotate %234 by %c1_i32_123 dim 0 : vector<8x128xf32>, i32 -> vector<8x128xf32>
    %264 = vector.shape_cast %246 : vector<1x128xf32> to vector<1x128xf32>
    %265 = vector.broadcast %264 : vector<1x128xf32> to vector<8x128xf32>
    %266 = arith.select %7, %265, %263 : vector<8x128xi1>, vector<8x128xf32>
    %267 = arith.subf %262, %266 : vector<8x128xf32>
    %cst_124 = arith.constant 1.000000e+02 : f32
    %268 = vector.broadcast %cst_124 : f32 to vector<8x128xf32>
    %269 = arith.mulf %268, %267 : vector<8x128xf32>
    %270 = math.absf %269 : vector<8x128xf32>
    %cst_125 = arith.constant 1.000000e+00 : f32
    %271 = vector.broadcast %cst_125 : f32 to vector<8x128xf32>
    %272 = arith.cmpf olt, %270, %271 : vector<8x128xf32>
    %273 = arith.andi %272, %22 : vector<8x128xi1>
    %274 = math.absf %218 : vector<8x128xf32>
    %cst_126 = arith.constant 5.000000e+00 : f32
    %275 = vector.broadcast %cst_126 : f32 to vector<8x128xf32>
    %276 = arith.cmpf olt, %274, %275 : vector<8x128xf32>
    %277 = arith.andi %273, %276 : vector<8x128xi1>
    %278 = math.absf %222 : vector<8x128xf32>
    %cst_127 = arith.constant 5.000000e+00 : f32
    %279 = vector.broadcast %cst_127 : f32 to vector<8x128xf32>
    %280 = arith.cmpf olt, %278, %279 : vector<8x128xf32>
    %281 = arith.andi %277, %280 : vector<8x128xi1>
    %282 = arith.subf %218, %222 : vector<8x128xf32>
    %283 = math.absf %282 : vector<8x128xf32>
    %cst_128 = arith.constant 1.000000e+00 : f32
    %284 = vector.broadcast %cst_128 : f32 to vector<8x128xf32>
    %285 = arith.cmpf olt, %283, %284 : vector<8x128xf32>
    %cst_129 = arith.constant 5.000000e-01 : f32
    %286 = vector.broadcast %cst_129 : f32 to vector<8x128xf32>
    %287 = arith.mulf %286, %282 : vector<8x128xf32>
    %288 = arith.mulf %287, %282 : vector<8x128xf32>
    %cst_130 = arith.constant 5.000000e-01 : f32
    %289 = vector.broadcast %cst_130 : f32 to vector<8x128xf32>
    %290 = arith.subf %283, %289 : vector<8x128xf32>
    %291 = arith.select %285, %288, %290 : vector<8x128xi1>, vector<8x128xf32>
    %cst_131 = arith.constant 0.000000e+00 : f32
    %292 = vector.broadcast %cst_131 : f32 to vector<8x128xf32>
    %293 = arith.select %281, %291, %292 : vector<8x128xi1>, vector<8x128xf32>
    %294 = vector.shape_cast %293 : vector<8x128xf32> to vector<1x8x128xf32>
    %cst_132 = arith.constant dense<0.000000e+00> : vector<1xf32>
    %295 = vector.multi_reduction <add>, %294, %cst_132 [1, 2] : vector<1x8x128xf32> to vector<1xf32>
    %296 = vector.shape_cast %295 : vector<1xf32> to vector<1x1x1xf32>
    %297 = vector.extract %296[0, 0, 0] : f32 from vector<1x1x1xf32>
    %298 = arith.extui %281 : vector<8x128xi1> to vector<8x128xi32>
    %299 = arith.sitofp %298 : vector<8x128xi32> to vector<8x128xf32>
    %300 = vector.shape_cast %299 : vector<8x128xf32> to vector<1x8x128xf32>
    %cst_133 = arith.constant dense<0.000000e+00> : vector<1xf32>
    %301 = vector.multi_reduction <add>, %300, %cst_133 [1, 2] : vector<1x8x128xf32> to vector<1xf32>
    %302 = vector.shape_cast %301 : vector<1xf32> to vector<1x1x1xf32>
    %303 = vector.extract %302[0, 0, 0] : f32 from vector<1x1x1xf32>
    %304 = arith.addf %165, %297 : f32
    %305 = vector.broadcast %304 : f32 to vector<1x1x8x128xf32>
    %c0_134 = arith.constant 0 : index
    %c0_135 = arith.constant 0 : index
    %c0_136 = arith.constant 0 : index
    %c0_137 = arith.constant 0 : index
    %306 = vector.load %arg12[%c0_134, %c0_135, %c0_136, %c0_137] : memref<1x1x8x128xf32, #tpu.memory_space<vmem>>, vector<1x1x8x128xf32>
    tpu.vector_store %arg12[%c0_134, %c0_135, %c0_136, %c0_137], %305 {strides = array<i32>} : memref<1x1x8x128xf32, #tpu.memory_space<vmem>>, vector<1x1x8x128xf32>,
    %307 = arith.addf %171, %303 : f32
    %308 = vector.broadcast %307 : f32 to vector<1x1x8x128xf32>
    %c0_138 = arith.constant 0 : index
    %c0_139 = arith.constant 0 : index
    %c0_140 = arith.constant 0 : index
    %c0_141 = arith.constant 0 : index
    %309 = vector.load %arg13[%c0_138, %c0_139, %c0_140, %c0_141] : memref<1x1x8x128xf32, #tpu.memory_space<vmem>>, vector<1x1x8x128xf32>
    tpu.vector_store %arg13[%c0_138, %c0_139, %c0_140, %c0_141], %308 {strides = array<i32>} : memref<1x1x8x128xf32, #tpu.memory_space<vmem>>, vector<1x1x8x128xf32>,
    return
  }
  func.func @transform_0(%arg0: i32, %arg1: i32) -> i32 {
    %c0_i32 = arith.constant 0 : i32
    %c0_i32_0 = arith.constant 0 : i32
    return %c0_i32 : i32
  }
  func.func @transform_1(%arg0: i32, %arg1: i32) -> i32 {
    %c0_i32 = arith.constant 0 : i32
    %c0_i32_0 = arith.constant 0 : i32
    return %c0_i32 : i32
  }
  func.func @transform_2(%arg0: i32, %arg1: i32) -> (i32, i32, i32, i32) {
    %c0_i32 = arith.constant 0 : i32
    %c0_i32_0 = arith.constant 0 : i32
    %c0_i32_1 = arith.constant 0 : i32
    return %arg0, %c0_i32, %arg1, %c0_i32_0 : i32, i32, i32, i32
  }
  func.func @transform_3(%arg0: i32, %arg1: i32) -> (i32, i32, i32, i32) {
    %c0_i32 = arith.constant 0 : i32
    %c0_i32_0 = arith.constant 0 : i32
    %c0_i32_1 = arith.constant 0 : i32
    return %arg0, %c0_i32, %arg1, %c0_i32_0 : i32, i32, i32, i32
  }
  func.func @transform_4(%arg0: i32, %arg1: i32) -> (i32, i32, i32, i32) {
    %c0_i32 = arith.constant 0 : i32
    %c0_i32_0 = arith.constant 0 : i32
    %c0_i32_1 = arith.constant 0 : i32
    return %arg0, %c0_i32, %arg1, %c0_i32_0 : i32, i32, i32, i32
  }
  func.func @transform_5(%arg0: i32, %arg1: i32) -> (i32, i32, i32, i32) {
    %c0_i32 = arith.constant 0 : i32
    %c0_i32_0 = arith.constant 0 : i32
    %c0_i32_1 = arith.constant 0 : i32
    return %arg0, %c0_i32, %arg1, %c0_i32_0 : i32, i32, i32, i32
  }
  func.func @transform_6(%arg0: i32, %arg1: i32) -> (i32, i32, i32, i32) {
    %c1_i32 = arith.constant 1 : i32
    %0 = arith.muli %arg1, %c1_i32 : i32
    %c1_i32_0 = arith.constant 1 : i32
    %1 = arith.subi %0, %c1_i32_0 : i32
    %c0_i32 = arith.constant 0 : i32
    %2 = arith.maxsi %1, %c0_i32 : i32
    %c0_i32_1 = arith.constant 0 : i32
    %c0_i32_2 = arith.constant 0 : i32
    %c0_i32_3 = arith.constant 0 : i32
    return %arg0, %c0_i32_1, %2, %c0_i32_2 : i32, i32, i32, i32
  }
  func.func @transform_7(%arg0: i32, %arg1: i32) -> (i32, i32, i32, i32) {
    %c1_i32 = arith.constant 1 : i32
    %0 = arith.addi %arg1, %c1_i32 : i32
    %c1_i32_0 = arith.constant 1 : i32
    %1 = arith.muli %0, %c1_i32_0 : i32
    %c1_i32_1 = arith.constant 1 : i32
    %2 = arith.minsi %1, %c1_i32_1 : i32
    %c0_i32 = arith.constant 0 : i32
    %c0_i32_2 = arith.constant 0 : i32
    %c0_i32_3 = arith.constant 0 : i32
    return %arg0, %c0_i32, %2, %c0_i32_2 : i32, i32, i32, i32
  }
  func.func @transform_8(%arg0: i32, %arg1: i32) -> (i32, i32, i32, i32) {
    %c1_i32 = arith.constant 1 : i32
    %0 = arith.muli %arg1, %c1_i32 : i32
    %c1_i32_0 = arith.constant 1 : i32
    %1 = arith.subi %0, %c1_i32_0 : i32
    %c0_i32 = arith.constant 0 : i32
    %2 = arith.maxsi %1, %c0_i32 : i32
    %c0_i32_1 = arith.constant 0 : i32
    %c0_i32_2 = arith.constant 0 : i32
    %c0_i32_3 = arith.constant 0 : i32
    return %arg0, %c0_i32_1, %2, %c0_i32_2 : i32, i32, i32, i32
  }
  func.func @transform_9(%arg0: i32, %arg1: i32) -> (i32, i32, i32, i32) {
    %c1_i32 = arith.constant 1 : i32
    %0 = arith.addi %arg1, %c1_i32 : i32
    %c1_i32_0 = arith.constant 1 : i32
    %1 = arith.muli %0, %c1_i32_0 : i32
    %c1_i32_1 = arith.constant 1 : i32
    %2 = arith.minsi %1, %c1_i32_1 : i32
    %c0_i32 = arith.constant 0 : i32
    %c0_i32_2 = arith.constant 0 : i32
    %c0_i32_3 = arith.constant 0 : i32
    return %arg0, %c0_i32, %2, %c0_i32_2 : i32, i32, i32, i32
  }
  func.func @transform_10(%arg0: i32, %arg1: i32) -> (i32, i32, i32, i32) {
    %c0_i32 = arith.constant 0 : i32
    %c0_i32_0 = arith.constant 0 : i32
    %c0_i32_1 = arith.constant 0 : i32
    return %arg0, %arg1, %c0_i32, %c0_i32_0 : i32, i32, i32, i32
  }
  func.func @transform_11(%arg0: i32, %arg1: i32) -> (i32, i32, i32, i32) {
    %c0_i32 = arith.constant 0 : i32
    %c0_i32_0 = arith.constant 0 : i32
    %c0_i32_1 = arith.constant 0 : i32
    return %arg0, %arg1, %c0_i32, %c0_i32_0 : i32, i32, i32, i32
  }
}

</mosaic_0001>

<bundles_post_ra>
// kernel: tpu_custom_call.1
= control target key start
LH: loop header
LB: loop body
LE: loop exit
PB: predicated region body
PF: predicated region fallthrough
CT: control target
= control target key end

     0   :  { %s3067_s0 = inlined_call_operand.hbm [shape: f32[2], index: 0, kind: input, shape index: {}]   ;;  %s3068_s1 = inlined_call_operand.vmem [shape: f32[2], index: 1, kind: input, shape index: {}]   ;;  %s3069_s2 = inlined_call_operand.hbm [shape: f32[2,1,16,128], index: 2, kind: input, shape index: {}]   ;;  %s3070_s3 = inlined_call_operand.hbm [shape: f32[2,1,16,128], index: 3, kind: input, shape index: {}]   ;;  %s3071_s4 = inlined_call_operand.hbm [shape: f32[2,3,16,128], index: 4, kind: input, shape index: {}]   ;;  %s3072_s5 = inlined_call_operand.hbm [shape: f32[2,1,16,128], index: 5, kind: input, shape index: {}]   ;;  %s3073_s6 = inlined_call_operand.hbm [shape: f32[2,1,16,128], index: 6, kind: input, shape index: {}]   ;;  %s3074_s7 = inlined_call_operand.hbm [shape: f32[2,1,16,128], index: 7, kind: input, shape index: {}]   ;;  %s3075_s8 = inlined_call_operand.hbm [shape: f32[2,1,16,128], index: 8, kind: input, shape index: {}]   ;;  %s3076_s9 = inlined_call_operand.vmem [shape: f32[2,1,16,128], index: 9, kind: input, shape index: {}]   ;;  %s3077_s10 = inlined_call_operand.hbm [shape: f32[2,2,8,128], index: 10, kind: output, shape index: {0}]   ;;  %s3078_s11 = inlined_call_operand.hbm [shape: f32[2,2,8,128], index: 11, kind: output, shape index: {1}]  }
   0x1   :  { %3120 = sst [smem:[#allocation49_spill]] %s3067_s0 }
   0x2   :  { %3121 = sst [smem:[#allocation50_spill]] %s3068_s1 }
   0x3   :  { %3122 = sst [smem:[#allocation51_spill]] %s3069_s2 }
   0x4   :  { %3123 = sst [smem:[#allocation52_spill]] %s3070_s3 }
   0x5   :  { %3124 = sst [smem:[#allocation53_spill]] %s3071_s4 }
   0x6   :  { %3125 = sst [smem:[#allocation54_spill]] %s3072_s5 }
   0x7   :  { %3126 = sst [smem:[#allocation55_spill]] %s3073_s6 }
   0x8   :  { %3127 = sst [smem:[#allocation56_spill]] %s3074_s7 }
   0x9   :  { %3128 = sst [smem:[#allocation57_spill]] %s3075_s8 }
   0xa   :  { %3129 = sst [smem:[#allocation58_spill]] %s3076_s9 }
   0xb   :  { %3130 = sst [smem:[#allocation59_spill]] %s3077_s10 }
   0xc   :  { %3131 = sst [smem:[#allocation60_spill]] %s3078_s11 }
   0xd   :  { %17 = vsyncpa [#allocation5], 0 }
   0xe   :  { %18 = vsyncpa [#allocation6], 0 }
   0xf   :  { %19 = vsyncpa [#allocation3], 0 }
  0x10   :  { %21 = vsyncpa [#allocation3 + $0x1], 0 }
  0x11   :  { %22 = vsyncpa [#allocation10], 0 }
  0x12   :  { %24 = vsyncpa [#allocation10 + $0x1], 0 }
  0x13   :  { %25 = vsyncpa [#allocation13], 0 }
  0x14   :  { %27 = vsyncpa [#allocation13 + $0x1], 0 }
  0x15   :  { %28 = vsyncpa [#allocation16], 0 }
  0x16   :  { %30 = vsyncpa [#allocation16 + $0x1], 0 }
  0x17   :  { %31 = vsyncpa [#allocation4], 0 }
  0x18   :  { %33 = vsyncpa [#allocation4 + $0x1], 0 }
  0x19   :  { %34 = vsyncpa [#allocation20], 0 }
  0x1a   :  { %36 = vsyncpa [#allocation20 + $0x1], 0  ;;  %s2222_s17 = smov 0   ;;  %s2224_s18 = smov 0  }
  0x1b   :  { %s2226_s19 = smov 0   ;;  %s2228_s20 = smov 0  }
  0x1c   :  { %s2230_s21 = smov 0   ;;  %s2232_s22 = smov 0  }
  0x1d   :  { %s2234_s23 = smov 0   ;;  %s2236_s24 = smov 0  }
  0x1e   :  { %s2238_s25 = smov 0   ;;  %s2240_s26 = smov 0  }
  0x1f   :  { %s2242_s27 = smov 0   ;;  %s2244_s28 = smov 0  }
  0x20   :  { %s2246_s29 = smov 0   ;;  %s2248_s30 = smov 0  }
  0x21 LB: > { %3132 = sst [smem:[#allocation31_spill]] %s2099_s19  ;;  %s1417_s12 = sadd.s32 4294967294, %s2143_s30   ;;  %s2143_s30 = sphi %s2248_s30, %s42_s30   ;;  %s2139_s29 = sphi %s2246_s29, %s3235_s29   ;;  %s2135_s28 = sphi %s2244_s28, %s3227_s28   ;;  %s2131_s27 = sphi %s2242_s27, %s3234_s27   ;;  %s2127_s26 = sphi %s2240_s26, %s3226_s26   ;;  %s2123_s25 = sphi %s2238_s25, %s3225_s25   ;;  %s2119_s24 = sphi %s2236_s24, %s3233_s24   ;;  %s2115_s23 = sphi %s2234_s23, %s3232_s23   ;;  %s2111_s22 = sphi %s2232_s22, %s3231_s22   ;;  %s2107_s21 = sphi %s2230_s21, %s3223_s21   ;;  %s2103_s20 = sphi %s2228_s20, %s3222_s20   ;;  %s2099_s19 = sphi %s2226_s19, %s3221_s19   ;;  %s2095_s18 = sphi %s2224_s18, %s3230_s18   ;;  %s2091_s17 = sphi %s2222_s17, %s3229_s17  }
  0x22   : > { %3133 = sst [smem:[#allocation32_spill]] %s2103_s20  ;;  %p3089_p0 = scmp.ne.s32.totalorder %s2123_s25, %s2119_s24 }
  0x23   : > { %3134 = sst [smem:[#allocation33_spill]] %s2107_s21  ;;  %p3092_p1 = scmp.eq.s32.totalorder %s2143_s30, 0 }
  0x24   : > { %3135 = sst [smem:[#allocation34_spill]] %s2111_s22  ;;  %p3090_p2 = scmp.ne.s32.totalorder %s2119_s24, %s2115_s23 }
  0x25   : > { %3136 = sst [smem:[#allocation35_spill]] %s2115_s23  ;;  %p370_p3 = scmp.eq.s32.totalorder %s1417_s12, 3 }
  0x26   : > { %3137 = sst [smem:[#allocation36_spill]] %s2123_s25  ;;  %p114_p4 = por %p3092_p1, %p3089_p0 }
  0x27   : > { %3138 = sst [smem:[#allocation37_spill]] %s2127_s26  ;;  %p2307_p5 = por %p370_p3, %p3090_p2 }
  0x28   : > { %3139 = sst [smem:[#allocation38_spill]] %s2131_s27  ;;  %p3091_p6 = scmp.lt.s32.totalorder %s2143_s30, 4 }
  0x29   : > { %3140 = sst [smem:[#allocation39_spill]] %s2135_s28  ;;  %s2313_s15 = sand.u32 1, %s2123_s25  }
  0x2a   : > { %s3141_s14 = scalar_select %p2307_p5, 1, 0 }
  0x2b   : > { %s1427_s16 = sshll.u32 %s2139_s29, 1  ;;  %s2317_s11 = sshll.u32 %s2313_s15, 3 }
  0x2c   : > { %3142 = sst [smem:[#allocation40_spill]] %s3141_s14  ;;  %s447_s13 = sadd.s32 %s2135_s28, %s1427_s16 }
  0x2d   : > { %s2320_s10 = sshll.u32 %s447_s13, 7  ;;  %p2324_p7 = pnand %p3091_p6, %p114_p4 }
  0x2e   : > { %s2329_s14 = sand.u32 1, %s2143_s30   ;;  %s3144_s3 = sld [smem:[#allocation52_spill]] }
  0x2f   : > { %s3143_s12 = scalar_select %p2324_p7, 1, 0 }
  0x30   : > { %s462_s13 = scalar_lea.vmem [#allocation9], %s2317_s11  ;;  %s3095_s6 = scalar_lea.sflag [#allocation10], %s2329_s14 }
  0x31   : > { %s471_s16 = sshll.u32 %s462_s13, 4  ;;  %p2346_p9 = pneg %p2324_p7  ;;  %s2338_s16 = int_to_ptr.vmem [resolvable:$true] %s471_s16 }
  0x34   : > { %s2335_s26 = scalar_lea.hbm %s3144_s3, %s2320_s10  ;;  %s1700_s22 = scalar_lea.hbm %s3144_s3, 512 }
  0x35   : > { %s1695_s20 = scalar_lea.hbm %s2335_s26, 128  ;;  %p1701_p12 = scmp.lt.u32.totalorder %s2335_s26, %s3144_s3 }
  0x36   : > { %p1696_p8 = scmp.ne.s32.totalorder %s2335_s26, %s1695_s20  ;;  %p1702_p13 = scmp.lt.u32.totalorder %s1700_s22, %s1695_s20 }
  0x37   : > { %p1704_p4 = scmp.lt.u32.totalorder %s1695_s20, %s2335_s26 }
  0x38   : > { %p1698_p10 = pnand %p2346_p9, %p1696_p8  ;;  %p1703_p3 = por %p1702_p13, %p1701_p12 }
  0x3a   : > { %p1699_p11 = pneg %p1698_p10  ;;  %p1705_p0 = por %p1704_p4, %p1703_p3 }
  0x3c   : > { %p1706_p2 = pnand %p1705_p0, %p1699_p11 }
  0x3e   : > { %1709 = shalt.err (!%p1706_p2)
}
  0x3f   : > { %s1710_s8 = scalar_lea.vmem %s2338_s16, 128  ;;  %s2145_s9 = smov [#allocation9]  }
  0x40   : > { %p1711_p8 = scmp.ne.s32.totalorder %s2338_s16, %s1710_s8  ;;  %s1715_s27 = sshll.u32 %s2145_s9, 4  ;;  %s1716_s27 = int_to_ptr.vmem [resolvable:$false] %s1715_s27 }
  0x41   : > { %s1717_s4 = scalar_lea.vmem %s1716_s27, 256  ;;  %p1718_p1 = scmp.lt.s32.totalorder %s2338_s16, %s1716_s27 }
  0x42   : > { %p1713_p10 = pnand %p1711_p8, %p2346_p9  ;;  %p1719_p5 = scmp.lt.s32.totalorder %s1717_s4, %s1710_s8 }
  0x44   : > { %p1714_p6 = pneg %p1713_p10  ;;  %p1720_p12 = por %p1719_p5, %p1718_p1 }
  0x46   : > { %p1721_p13 = pnand %p1720_p12, %p1714_p6 }
  0x48   : > { %1724 = shalt.err (!%p1721_p13)
}
  0x49   : > { %1530 = dma.hbm_to_vmem [thread:$0]  (!%p2324_p7), %s2335_s26, 128, %s2338_s16, %s3095_s6  }
  0x4a   : > { %s3146_s20 = smul.u32 24, %s2313_s15  ;;  %s3148_s5 = sld [smem:[#allocation54_spill]] }
  0x4b   : > { %s504_s4 = scalar_lea.vmem [#allocation12], %s2317_s11  ;;  %s3098_s0 = scalar_lea.sflag [#allocation13], %s2329_s14 }
  0x4c   : > { %s482_s22 = scalar_lea.vmem [#allocation11], %s3146_s20  ;;  %s513_s3 = sshll.u32 %s504_s4, 4  ;;  %s514_s3 = int_to_ptr.vmem [resolvable:$true] %s513_s3 }
  0x4d   : > { %s490_s13 = sshll.u32 %s482_s22, 4  ;;  %s2373_s13 = int_to_ptr.vmem [resolvable:$true] %s490_s13 }
  0x4e   : > { %3147 = sst [smem:[#allocation41_spill]] %s2373_s13 }
  0x50   : > { %s2379_s27 = scalar_lea.hbm %s3148_s5, %s2320_s10  ;;  %s1730_s20 = scalar_lea.hbm %s3148_s5, 512 }
  0x51   : > { %s1725_s2 = scalar_lea.hbm %s2379_s27, 128  ;;  %p1731_p5 = scmp.lt.u32.totalorder %s2379_s27, %s3148_s5 }
  0x52   : > { %p1726_p0 = scmp.ne.s32.totalorder %s2379_s27, %s1725_s2  ;;  %p1732_p6 = scmp.lt.u32.totalorder %s1730_s20, %s1725_s2 }
  0x53   : > { %p1734_p3 = scmp.lt.u32.totalorder %s1725_s2, %s2379_s27 }
  0x54   : > { %p1728_p1 = pnand %p1726_p0, %p2346_p9  ;;  %p1733_p11 = por %p1732_p6, %p1731_p5 }
  0x56   : > { %p1729_p2 = pneg %p1728_p1  ;;  %p1735_p4 = por %p1734_p3, %p1733_p11 }
  0x58   : > { %p1736_p8 = pnand %p1735_p4, %p1729_p2 }
  0x5a   : > { %1739 = shalt.err (!%p1736_p8)
}
  0x5b   : > { %s1740_s9 = scalar_lea.vmem %s514_s3, 128  ;;  %s2146_s4 = smov [#allocation12]  }
  0x5c   : > { %p1741_p10 = scmp.ne.s32.totalorder %s514_s3, %s1740_s9  ;;  %s1745_s6 = sshll.u32 %s2146_s4, 4  ;;  %s1746_s6 = int_to_ptr.vmem [resolvable:$false] %s1745_s6 }
  0x5d   : > { %s1747_s26 = scalar_lea.vmem %s1746_s6, 256  ;;  %p1748_p0 = scmp.lt.s32.totalorder %s514_s3, %s1746_s6 }
  0x5e   : > { %p1743_p12 = pnand %p1741_p10, %p2346_p9  ;;  %p1749_p1 = scmp.lt.s32.totalorder %s1747_s26, %s1740_s9 }
  0x60   : > { %p1744_p13 = pneg %p1743_p12  ;;  %p1750_p7 = por %p1749_p1, %p1748_p0 }
  0x62   : > { %p1751_p5 = pnand %p1750_p7, %p1744_p13 }
  0x64   : > { %1754 = shalt.err (!%p1751_p5)
}
  0x65   : > { %p3149_p6 = scmp.ne.s32.totalorder %s3143_s12, 0  ;;  %s51_s2 = sadd.s32 1, %s2135_s28 }
  0x66   : > { %s54_s6 = sadd.s32 1, %s2139_s29  ;;  %p52_p7 = scmp.ge.s32.totalorder %s51_s2, 2 }
  0x67   : > { %1536 = dma.hbm_to_vmem [thread:$0]  (!%p3149_p6), %s2379_s27, 128, %s514_s3, %s3098_s0  }
  0x68   : > { %s257_s16 = sadd.s32 1, %s2099_s19  ;;  %p264_p2 = scmp.ne.s32.totalorder %s2099_s19, %s2095_s18 }
  0x69   : > { %s3237_s2 = smov (%p52_p7, %s51_s2), 0  ;;  %s3239_s6 = smov (!%p52_p7, %s54_s6), %s2139_s29 }
  0x6a   : > { %3150 = sst [smem:[#allocation42_spill]] %s3237_s2  ;;  %s101_s20 = ssub.s32 %s2135_s28, %s3237_s2 }
  0x6b   : > { %p56_p11 = scmp.ge.s32.totalorder %s3239_s6, 2  ;;  %p3152_p3 = scmp.eq.s32.totalorder %s2143_s30, 0 }
  0x6c   : > { %s3154_s8 = sadd.s32 1, %s2123_s25  ;;  %s545_s26 = sand.u32 1, %s2099_s19  }
  0x6d   : > { %s3241_s6 = smov (%p56_p11, %s3239_s6), 0  ;;  %p2420_p4 = por %p264_p2, %p3152_p3 }
  0x6e   : > { %3151 = sst [smem:[#allocation43_spill]] %s3241_s6  ;;  %s2416_s3 = ssub.s32 %s2139_s29, %s3241_s6 }
  0x6f   : > { %s102_s22 = sor.u32 %s101_s20, %s2416_s3  ;;  %p3103_p10 = scmp.eq.s32.totalorder %s2416_s3, 0 }
  0x70   : > { %p103_p8 = scmp.eq.s32.totalorder %s102_s22, 0  ;;  %s1440_s0 = sshll.u32 %s545_s26, 3 }
  0x71   : > { %s2436_s4 = scalar_select %p3103_p10, %s2099_s19, %s257_s16  }
  0x72   : > { %s2431_s9 = scalar_select %p103_p8, %s2123_s25, %s3154_s8  }
  0x73   : > { %3156 = sst [smem:[#allocation45_spill]] %s2436_s4  ;;  %s2440_s5 = sshll.u32 %s2139_s29, 8 }
  0x74   : > { %3155 = sst [smem:[#allocation44_spill]] %s2431_s9  ;;  %s2086_s6 = sadd.s32 128, %s2440_s5 }
  0x75   : > { %s3157_s7 = sld [smem:[#allocation56_spill]]  ;;  %s547_s20 = scalar_lea.vmem [#allocation15], %s1440_s0 }
  0x76   : > { %s559_s22 = sshll.u32 %s547_s20, 4  ;;  %p3158_p13 = scmp.lt.s32.totalorder %s2143_s30, 4  ;;  %s2448_s22 = int_to_ptr.vmem [resolvable:$true] %s559_s22 }
  0x77   : > { %s3104_s8 = scalar_lea.sflag [#allocation16], %s2329_s14 }
  0x78   : > { %p2454_p0 = pnand %p3158_p13, %p2420_p4 }
  0x7a   : > { %p1757_p5 = pneg %p2454_p0 }
  0x7b   : > { %s2446_s28 = scalar_lea.hbm %s3157_s7, %s2086_s6  ;;  %s1760_s6 = scalar_lea.hbm %s3157_s7, 512 }
  0x7c   : > { %s1755_s13 = scalar_lea.hbm %s2446_s28, 128  ;;  %p1761_p11 = scmp.lt.u32.totalorder %s2446_s28, %s3157_s7 }
  0x7d   : > { %p1756_p1 = scmp.ne.s32.totalorder %s2446_s28, %s1755_s13  ;;  %p1762_p3 = scmp.lt.u32.totalorder %s1760_s6, %s1755_s13 }
  0x7e   : > { %p1764_p8 = scmp.lt.u32.totalorder %s1755_s13, %s2446_s28 }
  0x7f   : > { %p1758_p7 = pnand %p1757_p5, %p1756_p1  ;;  %p1763_p4 = por %p1762_p3, %p1761_p11 }
  0x81   : > { %p1759_p2 = pneg %p1758_p7  ;;  %p1765_p13 = por %p1764_p8, %p1763_p4 }
  0x83   : > { %p1766_p10 = pnand %p1765_p13, %p1759_p2 }
  0x85   : > { %1769 = shalt.err (!%p1766_p10)
}
  0x86   : > { %s1770_s20 = scalar_lea.vmem %s2448_s22, 128  ;;  %s2147_s0 = smov [#allocation15]  }
  0x87   : > { %p1771_p1 = scmp.ne.s32.totalorder %s2448_s22, %s1770_s20  ;;  %s1775_s2 = sshll.u32 %s2147_s0, 4  ;;  %s1776_s2 = int_to_ptr.vmem [resolvable:$false] %s1775_s2 }
  0x88   : > { %s1777_s27 = scalar_lea.vmem %s1776_s2, 256  ;;  %p1778_p6 = scmp.lt.s32.totalorder %s2448_s22, %s1776_s2 }
  0x89   : > { %p1773_p7 = pnand %p1771_p1, %p1757_p5  ;;  %p1779_p11 = scmp.lt.s32.totalorder %s1777_s27, %s1770_s20 }
  0x8b   : > { %p1774_p12 = pneg %p1773_p7  ;;  %p1780_p3 = por %p1779_p11, %p1778_p6 }
  0x8d   : > { %p1781_p4 = pnand %p1780_p3, %p1774_p12 }
  0x8f   : > { %1784 = shalt.err (!%p1781_p4)
}
  0x90   : > { %1542 = dma.hbm_to_vmem [thread:$0]  (!%p2454_p0), %s2446_s28, 128, %s2448_s22, %s3104_s8  }
  0x91   : > { %s2487_s13 = sadd.s32 4294967295, %s2143_s30   ;;  %p1422_p12 = scmp.ge.s32.totalorder %s2143_s30, 1 }
  0x92   : > { %p3114_p6 = scmp.eq.s32.totalorder %s2487_s13, 0  ;;  %p364_p10 = scmp.eq.s32.totalorder %s2487_s13, 3 }
  0x93   : > { %p405_p5 = scmp.lt.s32.totalorder %s2143_s30, 5  ;;  %p3160_p2 = scmp.ne.s32.totalorder %s2119_s24, %s2115_s23 }
  0x94   : > { %p3163_p13 = scmp.ne.s32.totalorder %s2095_s18, %s2091_s17  ;;  %p3166_p1 = scmp.ne.s32.totalorder %s2123_s25, %s2119_s24 }
  0x95   : > { %p2498_p8 = por %p3114_p6, %p3160_p2  ;;  %p2518_p11 = pnand %p1422_p12, %p405_p5 }
  0x96   : > { %p2507_p0 = por %p3163_p13, %p3114_p6  ;;  %p2514_p7 = por %p364_p10, %p3166_p1 }
  0x97   : > { %s3161_s16 = scalar_select %p2498_p8, 1, 0 }
  0x98   : > { %s3164_s28 = scalar_select %p2507_p0, 1, 0 }
  0x99   : > { %3162 = sst [smem:[#allocation46_spill]] %s3161_s16  ;;  %p1517_p3 = pneg %p2518_p11 }
  0x9a   : > { %3165 = sst [smem:[#allocation47_spill]] %s3164_s28  ;;  %s3170_s1 = sld [smem:[#allocation50_spill]] }
  0x9b   : > { %s3167_s22 = scalar_select %p2514_p7, 1, 0 }
  0x9c   : > { %s3169_s6 = scalar_select %p2518_p11, 1, 0 }
  0x9d   : > { %3168 = sst [smem:[#allocation48_spill]] %s3167_s22  ;;  %p2529_p4 = pnand %p1517_p3, %p3114_p6 }
  0x9e   : > { %s3172_s8 = sld [smem:[#allocation51_spill]]  ;;  %s442_s9 = scalar_lea.vmem [#allocation8], %s2317_s11 }
  0x9f   : > { %s451_s25 = sshll.u32 %s442_s9, 4  ;;  %s3173_s23 = sld [smem:[#allocation49_spill]]  ;;  %s2558_s25 = int_to_ptr.vmem [resolvable:$true] %s451_s25 }
  0xa0   : > { %s427_s17 = sshll.u32 %s3170_s1, 4  ;;  %p1787_p12 = pneg %p2529_p4  ;;  %s428_s17 = int_to_ptr.vmem [resolvable:$true] %s427_s17 }
  0xa4   : > { %s2537_s7 = scalar_lea.hbm %s3172_s8, %s2320_s10 }
  0xa5   : > { %s3174_s16 = smov %s3173_s23  ;;  %s1785_s22 = scalar_lea.hbm %s3173_s23, 16 }
  0xa6   : > { %p1786_p10 = scmp.ne.s32.totalorder %s3174_s16, %s1785_s22  ;;  %p1792_p13 = scmp.lt.u32.totalorder %s1785_s22, %s3174_s16 }
  0xa8   : > { %p1788_p5 = pnand %p1787_p12, %p1786_p10 }
  0xaa   : > { %p1789_p2 = pneg %p1788_p5 }
  0xac   : > { %p1794_p1 = pnand %p1792_p13, %p1789_p2 }
  0xae   : > { %1797 = shalt.err (!%p1794_p1)
}
  0xaf   : > { %s2148_s10 = smov [#allocation2]   ;;  %s1798_s23 = scalar_lea.vmem %s428_s17, 16 }
  0xb0   : > { %1520 = dma.hbm_to_smem (!%p2529_p4), %s3174_s16, 16, %s2148_s10, [#allocation5]  }
  0xb1   : > { %p1799_p3 = scmp.ne.s32.totalorder %s428_s17, %s1798_s23  ;;  %p1806_p0 = scmp.lt.s32.totalorder %s428_s17, %s428_s17 }
  0xb2   : > { %p1807_p10 = scmp.lt.s32.totalorder %s1798_s23, %s1798_s23 }
  0xb3   : > { %p1801_p6 = pnand %p1799_p3, %p1787_p12 }
  0xb4   : > { %p1808_p5 = por %p1807_p10, %p1806_p0 }
  0xb5   : > { %p1802_p7 = pneg %p1801_p6 }
  0xb7   : > { %p1809_p8 = pnand %p1808_p5, %p1802_p7 }
  0xb9   : > { %1812 = shalt.err (!%p1809_p8)
}
  0xba   : > { %s2149_s1 = smov [#allocation7]   ;;  %s1481_s9 = smul.u32 6, %s2139_s29 }
  0xbb   : > { %1523 = dma.vmem_to_smem (!%p2529_p4), %s428_s17, 16, %s2149_s1, [#allocation6]  }
  0xbc   : > { %s439_s4 = scalar_lea.sflag [#allocation3], %s2313_s15  ;;  %s1813_s28 = scalar_lea.hbm %s2537_s7, 128 }
  0xbd   : > { %p1814_p6 = scmp.ne.s32.totalorder %s2537_s7, %s1813_s28  ;;  %s1818_s0 = scalar_lea.hbm %s3172_s8, 512 }
  0xbe   : > { %p1819_p7 = scmp.lt.u32.totalorder %s2537_s7, %s3172_s8  ;;  %p1820_p12 = scmp.lt.u32.totalorder %s1818_s0, %s1813_s28 }
  0xbf   : > { %p1816_p0 = pnand %p1814_p6, %p2346_p9  ;;  %p1822_p4 = scmp.lt.u32.totalorder %s1813_s28, %s2537_s7 }
  0xc0   : > { %p1821_p2 = por %p1820_p12, %p1819_p7 }
  0xc1   : > { %p1817_p8 = pneg %p1816_p0 }
  0xc2   : > { %p1823_p13 = por %p1822_p4, %p1821_p2 }
  0xc4   : > { %p1824_p1 = pnand %p1823_p13, %p1817_p8 }
  0xc6   : > { %1827 = shalt.err (!%p1824_p1)
}
  0xc7   : > { %s1828_s15 = scalar_lea.vmem %s2558_s25, 128  ;;  %s2150_s17 = smov [#allocation8]  }
  0xc8   : > { %p1829_p3 = scmp.ne.s32.totalorder %s2558_s25, %s1828_s15  ;;  %s1833_s20 = sshll.u32 %s2150_s17, 4  ;;  %s1834_s20 = int_to_ptr.vmem [resolvable:$false] %s1833_s20 }
  0xc9   : > { %s1835_s10 = scalar_lea.vmem %s1834_s20, 256  ;;  %p1836_p6 = scmp.lt.s32.totalorder %s2558_s25, %s1834_s20 }
  0xca   : > { %p1831_p10 = pnand %p1829_p3, %p2346_p9  ;;  %p1837_p0 = scmp.lt.s32.totalorder %s1835_s10, %s1828_s15 }
  0xcc   : > { %p1832_p5 = pneg %p1831_p10  ;;  %p1838_p7 = por %p1837_p0, %p1836_p6 }
  0xce   : > { %p1839_p12 = pnand %p1838_p7, %p1832_p5 }
  0xd0   : > { %1842 = shalt.err (!%p1839_p12)
}
  0xd1   : > { %p3175_p8 = scmp.ne.s32.totalorder %s3143_s12, 0  ;;  %s3176_s11 = sld [smem:[#allocation39_spill]] }
  0xd2   : > { %s3177_s22 = sld [smem:[#allocation53_spill]] }
  0xd3   : > { %1527 = dma.hbm_to_vmem [thread:$0]  (!%p3175_p8), %s2537_s7, 128, %s2558_s25, %s439_s4  }
  0xd7   : > { %s487_s19 = sadd.s32 %s3176_s11, %s1481_s9 }
  0xd8   : > { %s1432_s23 = sshll.u32 %s487_s19, 7  ;;  %s3178_s2 = smov %s3177_s22 }
  0xd9   : > { %s2589_s0 = scalar_lea.hbm %s3177_s22, %s1432_s23  ;;  %s1848_s7 = scalar_lea.hbm %s3178_s2, 1536 }
  0xda   : > { %s1843_s27 = scalar_lea.hbm %s2589_s0, 384  ;;  %p1849_p1 = scmp.lt.u32.totalorder %s2589_s0, %s3178_s2 }
  0xdb   : > { %p1844_p2 = scmp.ne.s32.totalorder %s2589_s0, %s1843_s27  ;;  %p1850_p3 = scmp.lt.u32.totalorder %s1848_s7, %s1843_s27 }
  0xdc   : > { %p1852_p5 = scmp.lt.u32.totalorder %s1843_s27, %s2589_s0 }
  0xdd   : > { %p1846_p4 = pnand %p1844_p2, %p2346_p9  ;;  %p1851_p10 = por %p1850_p3, %p1849_p1 }
  0xdf   : > { %p1847_p13 = pneg %p1846_p4  ;;  %p1853_p6 = por %p1852_p5, %p1851_p10 }
  0xe1   : > { %p1854_p0 = pnand %p1853_p6, %p1847_p13 }
  0xe3   : > { %1857 = shalt.err (!%p1854_p0)
}
  0xe4   : > { %s3179_s4 = sld [smem:[#allocation41_spill]]  ;;  %s2151_s20 = smov [#allocation11]  }
  0xe5   : > { %s1863_s10 = sshll.u32 %s2151_s20, 4  ;;  %s1864_s10 = int_to_ptr.vmem [resolvable:$false] %s1863_s10 }
  0xe6   : > { %s1865_s11 = scalar_lea.vmem %s1864_s10, 768 }
  0xea   : > { %s1858_s17 = scalar_lea.vmem %s3179_s4, 384  ;;  %p1866_p4 = scmp.lt.s32.totalorder %s3179_s4, %s1864_s10 }
  0xeb   : > { %p1859_p7 = scmp.ne.s32.totalorder %s3179_s4, %s1858_s17  ;;  %p1867_p11 = scmp.lt.s32.totalorder %s1865_s11, %s1858_s17 }
  0xed   : > { %p1861_p12 = pnand %p1859_p7, %p2346_p9  ;;  %p1868_p1 = por %p1867_p11, %p1866_p4 }
  0xef   : > { %p1862_p2 = pneg %p1861_p12 }
  0xf1   : > { %p1869_p3 = pnand %p1868_p1, %p1862_p2 }
  0xf3   : > { %1872 = shalt.err (!%p1869_p3)
}
  0xf4   : > { %s2152_s19 = smov 256   ;;  %s3180_s23 = sld [smem:[#allocation34_spill]] }
  0xf5   : > { %s3181_s1 = sld [smem:[#allocation33_spill]]  ;;  %s2153_s28 = smov 128  }
  0xf6   : > { %s3182_s21 = sld [smem:[#allocation32_spill]]  ;;  %s2154_s22 = smov 8  }
  0xf7   : > { %s3183_s27 = scalar_lea.sflag [#allocation10], %s2329_s14  ;;  %p3184_p11 = scmp.eq.s32.totalorder %s2143_s30, 0 }
  0xf8   : > { %1533 = dma.hbm_to_vmem [thread:$0]  (!%p3175_p8), %s2589_s0, 384, %s3179_s4, %s3183_s27, %s2152_s19, %s2153_s28, %s2154_s22  }
  0xf9   : > { %p3185_p5 = scmp.eq.s32.totalorder %s2487_s13, 0  ;;  %p3187_p0 = scmp.eq.s32.totalorder %s2416_s3, 0 }
  0xfa   : > { %s223_s26 = sadd.s32 1, %s3180_s23  ;;  %s522_s15 = sand.u32 1, %s3180_s23  }
  0xfb   : > { %p230_p9 = scmp.ne.s32.totalorder %s3180_s23, %s3181_s1  ;;  %s1436_s25 = sshll.u32 %s522_s15, 3 }
  0xfc   : > { %p236_p10 = scmp.ne.s32.totalorder %s3181_s1, %s3182_s21  ;;  %s3243_s23 = smov (!%p3187_p0, %s3180_s23), %s223_s26 }
  0xfd   : > { %p232_p13 = por %p230_p9, %p3184_p11  ;;  %s524_s9 = scalar_lea.vmem [#allocation14], %s1436_s25 }
  0xfe   : > { %p2624_p6 = por %p236_p10, %p3185_p5  ;;  %s536_s17 = sshll.u32 %s524_s9, 4  ;;  %s2639_s17 = int_to_ptr.vmem [resolvable:$true] %s536_s17 }
  0xff   : > { %s3188_s0 = sld [smem:[#allocation55_spill]]  ;;  %p3189_p8 = scmp.lt.s32.totalorder %s2143_s30, 4 }
 0x100   : > { %s3191_s19 = sld [smem:[#allocation57_spill]]  ;;  %s570_s28 = scalar_lea.vmem [#allocation17], %s1436_s25 }
 0x101   : > { %p2643_p7 = pnand %p3189_p8, %p232_p13  ;;  %s582_s22 = sshll.u32 %s570_s28, 4  ;;  %s2653_s22 = int_to_ptr.vmem [resolvable:$true] %s582_s22 }
 0x103   : > { %p1875_p2 = pneg %p2643_p7 }
 0x105   : > { %s2637_s4 = scalar_lea.hbm %s3188_s0, %s2440_s5  ;;  %s1878_s9 = scalar_lea.hbm %s3188_s0, 512 }
 0x106   : > { %s3192_s1 = smov %s3191_s19  ;;  %s2651_s21 = scalar_lea.hbm %s3191_s19, %s2440_s5 }
 0x107   : > { %s1873_s27 = scalar_lea.hbm %s2637_s4, 128  ;;  %p1879_p3 = scmp.lt.u32.totalorder %s2637_s4, %s3188_s0 }
 0x108   : > { %p1874_p12 = scmp.ne.s32.totalorder %s2637_s4, %s1873_s27  ;;  %p1880_p9 = scmp.lt.u32.totalorder %s1878_s9, %s1873_s27 }
 0x109   : > { %p1882_p13 = scmp.lt.u32.totalorder %s1873_s27, %s2637_s4 }
 0x10a   : > { %p1876_p4 = pnand %p1875_p2, %p1874_p12  ;;  %p1881_p11 = por %p1880_p9, %p1879_p3 }
 0x10c   : > { %p1877_p1 = pneg %p1876_p4  ;;  %p1883_p10 = por %p1882_p13, %p1881_p11 }
 0x10e   : > { %p1884_p5 = pnand %p1883_p10, %p1877_p1 }
 0x110   : > { %1887 = shalt.err (!%p1884_p5)
}
 0x111   : > { %s1888_s5 = scalar_lea.vmem %s2639_s17, 128  ;;  %s2155_s25 = smov [#allocation14]  }
 0x112   : > { %p1889_p0 = scmp.ne.s32.totalorder %s2639_s17, %s1888_s5  ;;  %s1893_s3 = sshll.u32 %s2155_s25, 4  ;;  %s1894_s3 = int_to_ptr.vmem [resolvable:$false] %s1893_s3 }
 0x113   : > { %s1895_s11 = scalar_lea.vmem %s1894_s3, 256  ;;  %p1896_p4 = scmp.lt.s32.totalorder %s2639_s17, %s1894_s3 }
 0x114   : > { %p1891_p8 = pnand %p1889_p0, %p1875_p2  ;;  %p1897_p3 = scmp.lt.s32.totalorder %s1895_s11, %s1888_s5 }
 0x116   : > { %p1892_p12 = pneg %p1891_p8  ;;  %p1898_p9 = por %p1897_p3, %p1896_p4 }
 0x118   : > { %p1899_p11 = pnand %p1898_p9, %p1892_p12 }
 0x11a   : > { %1902 = shalt.err (!%p1899_p11)
}
 0x11b   : > { %s3193_s19 = scalar_lea.sflag [#allocation13], %s2329_s14  ;;  %s1903_s28 = scalar_lea.hbm %s2651_s21, 128 }
 0x11c   : > { %1539 = dma.hbm_to_vmem [thread:$0]  (!%p2643_p7), %s2637_s4, 128, %s2639_s17, %s3193_s19  }
 0x11d   : > { %p1904_p1 = scmp.ne.s32.totalorder %s2651_s21, %s1903_s28  ;;  %s1908_s15 = scalar_lea.hbm %s3192_s1, 512 }
 0x11e   : > { %p1909_p5 = scmp.lt.u32.totalorder %s2651_s21, %s3192_s1  ;;  %p1910_p0 = scmp.lt.u32.totalorder %s1908_s15, %s1903_s28 }
 0x11f   : > { %p1906_p13 = pnand %p1904_p1, %p1875_p2  ;;  %p1912_p12 = scmp.lt.u32.totalorder %s1903_s28, %s2651_s21 }
 0x120   : > { %p1911_p8 = por %p1910_p0, %p1909_p5 }
 0x121   : > { %p1907_p10 = pneg %p1906_p13 }
 0x122   : > { %p1913_p4 = por %p1912_p12, %p1911_p8 }
 0x124   : > { %p1914_p3 = pnand %p1913_p4, %p1907_p10 }
 0x126   : > { %1917 = shalt.err (!%p1914_p3)
}
 0x127   : > { %s1918_s17 = scalar_lea.vmem %s2653_s22, 128  ;;  %s2156_s4 = smov [#allocation17]  }
 0x128   : > { %p1919_p9 = scmp.ne.s32.totalorder %s2653_s22, %s1918_s17  ;;  %s1923_s20 = sshll.u32 %s2156_s4, 4  ;;  %s1924_s20 = int_to_ptr.vmem [resolvable:$false] %s1923_s20 }
 0x129   : > { %s1925_s5 = scalar_lea.vmem %s1924_s20, 256  ;;  %p1926_p13 = scmp.lt.s32.totalorder %s2653_s22, %s1924_s20 }
 0x12a   : > { %p1921_p11 = pnand %p1919_p9, %p1875_p2  ;;  %p1927_p5 = scmp.lt.s32.totalorder %s1925_s5, %s1918_s17 }
 0x12c   : > { %p1922_p1 = pneg %p1921_p11  ;;  %p1928_p0 = por %p1927_p5, %p1926_p13 }
 0x12e   : > { %p1929_p8 = pnand %p1928_p0, %p1922_p1 }
 0x130   : > { %1932 = shalt.err (!%p1929_p8)
}
 0x131   : > { %s3194_s25 = scalar_lea.sflag [#allocation16], %s2329_s14  ;;  %p3195_p10 = scmp.ne.s32.totalorder %s3169_s6, 0 }
 0x132   : > { %1545 = dma.hbm_to_vmem [thread:$0]  (!%p2643_p7), %s2651_s21, 128, %s2653_s22, %s3194_s25  }
 0x133   : > { %608 = sbr.rel (%p3195_p10) target bundleno = 779 (0x30b), region = 60  ;;  %p3196_p2 = scmp.eq.s32.totalorder (!%p3195_p10), %s2487_s13, 0 }
 0x13a   : > { %2046 = dma.done.wait (%p3196_p2), [#allocation5], 16   ;;  %p3197_p12 = pmov %p3196_p2 }
 0x13b   : > { %p3198_p4 = pmov %p3196_p2 }
 0x13c   : > { %2048 = vsyncadd (%p3197_p12), [#allocation5], 4294967280 }
 0x13d   : > { %2050 = dma.done.wait (%p3198_p4), [#allocation6], 16   ;;  %p3199_p3 = pmov %p3196_p2 }
 0x13e   : > { %s3200_s14 = sld [smem:[#allocation46_spill]]  ;;  %s2718_s10 = sand.u32 1, %s2119_s24  }
 0x13f   : > { %2052 = vsyncadd (%p3199_p3), [#allocation6], 4294967280  ;;  %s2721_s6 = sshll.u32 %s2718_s10, 3  ;;  %s619_s21 = scalar_lea.sflag [#allocation3], %s2718_s10 }
 0x140   : > { %s622_s22 = scalar_lea.vmem [#allocation8], %s2721_s6 }
 0x144   : > { %p3201_p7 = scmp.ne.s32.totalorder %s3200_s14, 0 }
 0x146   : > { %2054 = dma.done.wait (%p3201_p7), %s619_s21, 128  }
 0x147   : > { %2056 = vsyncadd (%p3201_p7), %s619_s21, 4294967168  ;;  %s627_s3 = sand.u32 1, %s2487_s13   ;;  %s631_s19 = scalar_lea.vmem [#allocation9], %s2721_s6 }
 0x148   : > { %s628_s11 = scalar_lea.sflag [#allocation10], %s627_s3 }
 0x149   : > { %2058 = dma.done.wait (%p3201_p7), %s628_s11, 512  }
 0x14a   : > { %2060 = vsyncadd (%p3201_p7), %s628_s11, 4294966784  ;;  %s1482_s28 = smul.u32 24, %s2718_s10  ;;  %s646_s26 = scalar_lea.sflag [#allocation13], %s627_s3 }
 0x14b   : > { %s649_s15 = scalar_lea.vmem [#allocation12], %s2721_s6 }
 0x14c   : > { %s2736_s27 = scalar_lea.vmem [#allocation11], %s1482_s28 }
 0x14d   : > { %2062 = dma.done.wait (%p3201_p7), %s646_s26, 128  }
 0x14e   : > { %2064 = vsyncadd (%p3201_p7), %s646_s26, 4294967168  ;;  %s3202_s13 = sld [smem:[#allocation33_spill]] }
 0x154   : > { %s656_s9 = sand.u32 1, %s3202_s13  }
 0x155   : > { %s2744_s12 = sshll.u32 %s656_s9, 3 }
 0x156   : > { %s658_s17 = scalar_lea.vmem [#allocation14], %s2744_s12 }
 0x157   : > { %2066 = dma.done.wait (%p2624_p6), %s646_s26, 128  }
 0x158   : > { %2068 = vsyncadd (%p2624_p6), %s646_s26, 4294967168  ;;  %s3203_s4 = sld [smem:[#allocation47_spill]]  ;;  %s665_s20 = sand.u32 1, %s2095_s18  }
 0x159   : > { %s2752_s5 = sshll.u32 %s665_s20, 3  ;;  %s664_s25 = scalar_lea.sflag [#allocation16], %s627_s3 }
 0x15a   : > { %s667_s14 = scalar_lea.vmem [#allocation15], %s2752_s5 }
 0x15e   : > { %p3204_p9 = scmp.ne.s32.totalorder %s3203_s4, 0 }
 0x160   : > { %2070 = dma.done.wait (%p3204_p9), %s664_s25, 128  }
 0x161   : > { %2072 = vsyncadd (%p3204_p9), %s664_s25, 4294967168  ;;  %s676_s21 = scalar_lea.vmem [#allocation17], %s2744_s12 }
 0x162   : > { %2074 = dma.done.wait (%p2624_p6), %s664_s25, 128  }
 0x163   : > { %2076 = vsyncadd (%p2624_p6), %s664_s25, 4294967168 }
 0x164   : > { %681 = sfence }
 0x165   : > { %v2764_v0 = vld [vmem:[%s622_s22] sm:$0xff]  ;;  %s3205_s11 = sld [smem:[#allocation37_spill]]  ;;  %s3206_s3 = sld [smem:[#allocation38_spill]]  ;;  %v785_v1 = vlaneseq  ;;  %v794_v14 = vld [vmem:[%s631_s19] sm:$0xff]  ;;  %v1464_v22 = vld [vmem:[%s2736_s27 + $0x8] sm:$0xff] }
 0x166   : > { %v1463_v2 = vld [vmem:[%s2736_s27 + $0x10] sm:$0xff]  ;;  %s2157_s28 = smov 1   ;;  %s2158_s22 = smov 127   ;;  %v850_v7 = vrot.slane %v2764_v0, 1  ;;  %v844_v9 = vrot.slane %v2764_v0, 7  ;;  %v818_v21 = vld [vmem:[%s2736_s27] sm:$0xff] }
 0x167   : > { %933 = vrot.lane.b32.xlu0 %v2764_v0, %s2157_s28  ;;  %v2771_v3 = vshrl.u32 %v785_v1, 7  ;;  %vm815_vm0 = vcmp.eq.f32.partialorder %v1463_v2, 0.0  ;;  %v2817_v16 = vand.u32 127, %v785_v1  ;;  %v872_v26 = vrot.slane %v794_v14, 7 }
 0x168   : > { %v816_v4 = vsel %vm815_vm0, 1e-10, %v1463_v2  ;;  %v858_v27 = vmul.f32 0.25, %v2764_v0  ;;  %v878_v31 = vrot.slane %v794_v14, 1  ;;  %v2866_v47 = vmul.f32 0.25, %v794_v14 }
 0x169   : > { %v2782_v5 = vsub.s32 0, %v2771_v3  ;;  %1691 = vrcp.f32 %v816_v4  ;;  %v847_v6 = vsub.s32 7, %v2771_v3  ;;  %vm792_vm1 = vcmp.eq.s32.totalorder %v2771_v3, 7 }
 0x16a   : > { %vm791_vm2 = vcmp.eq.s32.totalorder %v2771_v3, 0  ;;  %v825_v23 = vcvt.s32.f32 %v2817_v16  ;;  %vm789_vm4 = vcmp.gt.s32.totalorder %v2817_v16, 0  ;;  %vm790_vm5 = vcmp.lt.s32.totalorder %v2817_v16, 127 }
 0x16b   : > { %p804_p11 = scmp.lt.s32.totalorder %s3205_s11, 1  ;;  %p799_p1 = scmp.gt.s32.totalorder %s3205_s11, 0  ;;  %936 = vrot.lane.b32.xlu0 %v2764_v0, %s2158_s22 }
 0x16c   : > { %s771_s7 = sadd.s32 1, %s3205_s11  ;;  %p774_p6 = scmp.lt.s32.totalorder %s3206_s3, 1  ;;  %v1465_v35 = vadd.f32 -8.0, %v825_v23 }
 0x16d   : > { %p2777_p13 = scmp.lt.s32.totalorder %s771_s7, 1  ;;  %s2830_s12 = sld [smem:[#allocation2 + %s3206_s3]] }
 0x16e   : > { %s2784_s13 = scalar_select %p804_p11, 255, 0 }
 0x16f   : > { %s1683_s9 = scalar_select %p799_p1, 255, 0 }
 0x170   : > { %v2789_v8 = vld [vmem:[%s667_s14] sm:%s2784_s13]  ;;  %s3245_s7 = smov (!%p2777_p13, %s771_s7), 1  ;;  %s2834_s5 = sld [smem:[#allocation7 + %s3206_s3]] }
 0x171   : > { %961 = vrot.lane.b32.xlu1 %v2789_v8, %s2158_s22  ;;  %v854_v10 = vrot.slane %v2789_v8, %v2782_v5  ;;  %958 = vrot.lane.b32.xlu0 %v2789_v8, %s2157_s28  ;;  %v2801_v11 = vld [vmem:[%s658_s17] sm:%s1683_s9]  ;;  %s775_s17 = scalar_select %p774_p6, %s3206_s3, 1 }
 0x172   : > { %v943_v12 = vrot.slane %v2801_v11, 7  ;;  %v848_v13 = vrot.slane %v2801_v11, %v847_v6  ;;  %v2812_v15 = vld [vmem:[%s676_s21] sm:%s1683_s9]  ;;  %s3247_s7 = smov (!%p2777_p13, %s3245_s7), 1  ;;  %s3208_s21 = sld [smem:[#allocation58_spill]] }
 0x173   : > { %v855_v17 = vsel %vm792_vm1, %v854_v10, %v850_v7  ;;  %s1461_s4 = sshll.u32 %s775_s17, 1  ;;  %v996_v19 = vrot.slane %v2812_v15, 7  ;;  %v1692_v24 = vpop.eup %1691  ;;  %v876_v25 = vrot.slane %v2812_v15, %v847_v6  ;;  %v832_v39 = vstv %s2830_s12  ;;  %s1079_s14 = scalar_lea.sflag [#allocation4], %s2718_s10 }
 0x174   : > { %v849_v18 = vsel %vm791_vm2, %v848_v13, %v844_v9  ;;  %s779_s19 = sadd.s32 %s1461_s4, %s3247_s7  ;;  %s1466_s7 = sshll.u32 %s3205_s11, 3  ;;  %v2843_v28 = vmul.f32 %v1692_v24, %v818_v21  ;;  %v2847_v32 = vmul.f32 %v1692_v24, %v1464_v22  ;;  %v966_v6 = vmul.f32 0.25, %v2789_v8 }
 0x175   : > { %945 = vrot.lane.b32.xlu1 %v943_v12, %s2157_s28  ;;  %986 = vrot.lane.b32.xlu0 %v794_v14, %s2157_s28  ;;  %v856_v20 = vadd.f32 %v855_v17, %v849_v18  ;;  %s1462_s20 = sshll.u32 %s779_s19, 3  ;;  %v828_v29 = vstv %s1466_s7  ;;  %v877_v37 = vsel %vm791_vm2, %v876_v25, %v872_v26  ;;  %v953_v17 = vmul.f32 0.25, %v2801_v11  ;;  %s754_s19 = scalar_lea.vmem [#allocation18], %s2721_s6 }
 0x176   : > { %v829_v33 = vadd.s32 %v828_v29, %v2771_v3  ;;  %v833_v40 = vmul.f32 %v832_v39, %v2843_v28  ;;  %v836_v41 = vstv %s2834_s5  ;;  %s982_s27 = smul.f32 -100.0, %s2834_s5 }
 0x177   : > { %v857_v30 = vmul.f32 0.125, %v856_v20  ;;  %v837_v45 = vmul.f32 %v836_v41, %v2847_v32  ;;  %v955_v22 = vrot.slane %v953_v17, 7 }
 0x178   : > { %s781_s26 = scalar_lea.vmem %s3208_s21, %s1462_s20  ;;  %v830_v38 = vcvt.s32.f32 %v829_v33  ;;  %v834_v48 = vmul.f32 %v1465_v35, %v833_v40  ;;  %v983_v29 = vstv %s982_s27  ;;  %v1006_v35 = vmul.f32 0.25, %v2812_v15  ;;  %s1099_s20 = sshll.u32 %s754_s19, 4  ;;  %s2953_s20 = int_to_ptr.vmem [resolvable:$true] %s1099_s20 }
 0x179   : > { %948 = vrot.lane.b32.xlu1 %v943_v12, %s2158_s22  ;;  %998 = vrot.lane.b32.xlu0 %v996_v19, %s2157_s28  ;;  %v2851_v34 = vld [vmem:[%s781_s26] sm:%s2784_s13]  ;;  %v859_v42 = vadd.f32 %v858_v27, %v857_v30  ;;  %s3210_s21 = sld [smem:[#allocation59_spill]]  ;;  %s3119_s27 = scalar_lea.vmem [#allocation19], %s2721_s6 }
 0x17a   : > { %v882_v36 = vrot.slane %v2851_v34, %v2782_v5  ;;  %v1467_v44 = vadd.f32 -8.0, %v830_v38  ;;  %v835_v51 = vadd.f32 1.0, %v834_v48 }
 0x17c   : > { %v883_v43 = vsel %vm792_vm1, %v882_v36, %v878_v31  ;;  %v838_v49 = vmul.f32 %v1467_v44, %v837_v45 }
 0x17d   : > { %989 = vrot.lane.b32.xlu1 %v794_v14, %s2158_s22  ;;  %1011 = vrot.lane.b32.xlu0 %v2851_v34, %s2157_s28  ;;  %v884_v46 = vadd.f32 %v883_v43, %v877_v37  ;;  %v984_v37 = vmul.f32 %v983_v29, %v2847_v32  ;;  %v1008_v43 = vrot.slane %v1006_v35, 7 }
 0x17e   : > { %v839_v53 = vadd.f32 %v838_v49, %v835_v51 }
 0x17f   : > { %v885_v50 = vmul.f32 0.125, %v884_v46  ;;  %s3211_s7 = smov %s3210_s21 }
 0x180   : > { %vm840_vm3 = vcmp.eq.f32.partialorder %v839_v53, 0.0 }
 0x181   : > { %1001 = vrot.lane.b32.xlu1 %v996_v19, %s2158_s22  ;;  %860 = vrot.lane.b32.xlu0 %v859_v42, %s2158_s22  ;;  %v887_v52 = vadd.f32 %v2866_v47, %v885_v50  ;;  %v841_v54 = vsel %vm840_vm3, 1e-10, %v839_v53 }
 0x182   : > { %1693 = vrcp.f32 %v841_v54 }
 0x185   : > { %1014 = vrot.lane.b32.xlu1 %v2851_v34, %s2158_s22  ;;  %888 = vrot.lane.b32.xlu0 %v887_v52, %s2158_s22 }
 0x189   : > { %863 = vrot.lane.b32.xlu1 %v859_v42, %s2157_s28 }
 0x18c   : > { %v1694_v55 = vpop.eup %1693 }
 0x18d   : > { %891 = vrot.lane.b32.xlu1 %v887_v52, %s2157_s28  ;;  %v2877_v56 = vmul.f32 %v1694_v55, %v2764_v0  ;;  %s868_s28 = smul.f32 -100.0, %s2830_s12  ;;  %s3209_s12 = sld [smem:[#allocation48_spill]] }
 0x18f   : > { %v869_v48 = vstv %s868_s28  ;;  %v985_v32 = vmul.f32 %v984_v37, %v2877_v56 }
 0x193   : > { %p3214_p0 = scmp.ne.s32.totalorder %s3209_s12, 0 }
 0x1d9   : > { %v934_v57 = vpop.permute.xlu0 %933 }
 0x1da   : > { %v935_v58 = vsel %vm789_vm4, %v934_v57, 0.0 }
 0x1dd   : > { %v937_v59 = vpop.permute.xlu0 %936 }
 0x1de   : > { %v938_v60 = vsel %vm790_vm5, %v937_v59, 0.0  ;;  %v870_v59 = vmul.f32 %v869_v48, %v2843_v28 }
 0x1df   : > { %v939_v61 = vadd.f32 %v938_v60, %v935_v58  ;;  %v1019_v58 = vmul.f32 0.25, %v2851_v34 }
 0x1e1   : > { %v940_v62 = vmul.f32 0.125, %v939_v61 }
 0x1e3   : > { %v962_v63 = vpop.permute.xlu1 %961  ;;  %v959_v1 = vpop.permute.xlu0 %958  ;;  %v941_v4 = vadd.f32 %v940_v62, %v858_v27 }
 0x1e4   : > { %v963_v0 = vsel %vm790_vm5, %v962_v63, 0.0  ;;  %v960_v2 = vsel %vm789_vm4, %v959_v1, 0.0 }
 0x1e5   : > { %v964_v7 = vadd.f32 %v963_v0, %v960_v2  ;;  %v968_v13 = vrot.slane %v941_v4, 1  ;;  %v974_v38 = vrot.slane %v941_v4, 7 }
 0x1e7   : > { %v965_v9 = vmul.f32 0.125, %v964_v7  ;;  %v946_v10 = vpop.permute.xlu1 %945  ;;  %v987_v12 = vpop.permute.xlu0 %986 }
 0x1e8   : > { %v947_v21 = vsel %vm789_vm4, %v946_v10, 0.0  ;;  %v988_v11 = vsel %vm789_vm4, %v987_v12, 0.0 }
 0x1e9   : > { %v967_v14 = vadd.f32 %v966_v6, %v965_v9  ;;  %v871_v6 = vmul.f32 %v870_v59, %v2877_v56 }
 0x1eb   : > { %v972_v18 = vrot.slane %v967_v14, %v2782_v5  ;;  %v949_v19 = vpop.permute.xlu1 %948  ;;  %v999_v20 = vpop.permute.xlu0 %998 }
 0x1ec   : > { %v950_v8 = vsel %vm790_vm5, %v949_v19, 0.0  ;;  %v1000_v36 = vsel %vm789_vm4, %v999_v20, 0.0  ;;  %v795_v19 = vld [vmem:[%s649_s15] sm:$0xff]  ;;  %s1474_s15 = sshll.u32 %s3206_s3, 1  ;;  %s1114_s3 = sshll.u32 %s3119_s27, 4  ;;  %s2964_s3 = int_to_ptr.vmem [resolvable:$true] %s1114_s3 }
 0x1ed   : > { %v951_v23 = vadd.f32 %v950_v8, %v947_v21  ;;  %v973_v24 = vsel %vm792_vm1, %v972_v18, %v968_v13  ;;  %v902_v8 = vand.u32 2147483647, %v871_v6  ;;  %vm796_vm6 = vcmp.ne.f32.partialorder %v795_v19, 0.0  ;;  %s1095_s22 = sadd.s32 %s3205_s11, %s1474_s15 }
 0x1ee   : > { %s1475_s17 = sshll.u32 %s1095_s22, 7  ;;  %s3212_s22 = sld [smem:[#allocation60_spill]] }
 0x1ef   : > { %v952_v25 = vmul.f32 0.125, %v951_v23  ;;  %v990_v26 = vpop.permute.xlu1 %989  ;;  %v1012_v27 = vpop.permute.xlu0 %1011  ;;  %vm903_vm8 = vcmp.lt.f32.partialorder %v902_v8, 5.0  ;;  %s2948_s26 = scalar_lea.hbm %s3210_s21, %s1475_s17  ;;  %s1933_s21 = scalar_lea.vmem %s2953_s20, 128 }
 0x1f0   : > { %v991_v30 = vsel %vm790_vm5, %v990_v26, 0.0  ;;  %v1013_v46 = vsel %vm789_vm4, %v1012_v27, 0.0  ;;  %p1934_p5 = scmp.ne.s32.totalorder %s2953_s20, %s1933_s21 }
 0x1f1   : > { %v957_v31 = vadd.f32 %v955_v22, %v952_v25  ;;  %v992_v33 = vadd.f32 %v991_v30, %v988_v11  ;;  %v1041_v30 = vand.u32 2147483647, %v985_v32 }
 0x1f2   : > { %p1935_p8 = pnand %p1934_p5, %p3214_p0 }
 0x1f3   : > { %v978_v39 = vrot.slane %v957_v31, %v2782_v5  ;;  %v993_v40 = vmul.f32 0.125, %v992_v33  ;;  %v1002_v41 = vpop.permute.xlu1 %1001  ;;  %v861_v45 = vpop.permute.xlu0 %860  ;;  %vm1042_vm15 = vcmp.lt.f32.partialorder %v1041_v30, 5.0 }
 0x1f4   : > { %v1003_v42 = vsel %vm790_vm5, %v1002_v41, 0.0  ;;  %v862_v60 = vsel %vm790_vm5, %v861_v45, 0.0  ;;  %p1936_p10 = pneg %p1935_p8 }
 0x1f5   : > { %v1004_v44 = vadd.f32 %v1003_v42, %v1000_v36  ;;  %v979_v15 = vsel %vm791_vm2, %v978_v39, %v974_v38  ;;  %v994_v50 = vadd.f32 %v993_v40, %v2866_v47  ;;  %v2159_v36 = vmov 0.0  }
 0x1f6   : > { %v980_v49 = vsub.f32 %v973_v24, %v979_v15 }
 0x1f7   : > { %v1005_v51 = vmul.f32 0.125, %v1004_v44  ;;  %v1015_v52 = vpop.permute.xlu1 %1014  ;;  %v1027_v62 = vrot.slane %v994_v50, 7  ;;  %v889_v0 = vpop.permute.xlu0 %888  ;;  %v1021_v9 = vrot.slane %v994_v50, 1 }
 0x1f8   : > { %v1016_v53 = vsel %vm790_vm5, %v1015_v52, 0.0  ;;  %v981_v54 = vmul.f32 100.0, %v980_v49  ;;  %v890_v7 = vsel %vm790_vm5, %v889_v0, 0.0 }
 0x1f9   : > { %v1010_v55 = vadd.f32 %v1008_v43, %v1005_v51  ;;  %v1017_v57 = vadd.f32 %v1016_v53, %v1013_v46 }
 0x1fa   : > { %v1044_v61 = vsub.f32 %v981_v54, %v985_v32  ;;  %v1038_v3 = vand.u32 2147483647, %v981_v54 }
 0x1fb   : > { %v1031_v63 = vrot.slane %v1010_v55, %v2782_v5  ;;  %v1018_v47 = vmul.f32 0.125, %v1017_v57  ;;  %v864_v1 = vpop.permute.xlu1 %863 }
 0x1fc   : > { %v865_v2 = vsel %vm789_vm4, %v864_v1, 0.0  ;;  %v1045_v25 = vand.u32 2147483647, %v1044_v61  ;;  %v1047_v26 = vmul.f32 0.5, %v1044_v61 }
 0x1fd   : > { %v1020_v4 = vadd.f32 %v1019_v58, %v1018_v47  ;;  %v866_v34 = vsub.f32 %v862_v60, %v865_v2  ;;  %v1032_v28 = vsel %vm791_vm2, %v1031_v63, %v1027_v62  ;;  %vm1039_vm2 = vcmp.lt.f32.partialorder %v1038_v3, 5.0 }
 0x1fe   : > { %v1048_v31 = vmul.f32 %v1047_v26, %v1044_v61  ;;  %v1470_v33 = vadd.f32 -0.5, %v1045_v25  ;;  %vm1046_vm0 = vcmp.lt.f32.partialorder %v1045_v25, 1.0 }
 0x1ff   : > { %v1025_v10 = vrot.slane %v1020_v4, %v2782_v5  ;;  %v867_v12 = vmul.f32 100.0, %v866_v34  ;;  %v892_v13 = vpop.permute.xlu1 %891 }
 0x200   : > { %v893_v14 = vsel %vm789_vm4, %v892_v13, 0.0  ;;  %v1050_v39 = vsel %vm1046_vm0, %v1048_v31, %v1470_v33 }
 0x201   : > { %v905_v17 = vsub.f32 %v867_v12, %v871_v6  ;;  %v894_v18 = vsub.f32 %v890_v7, %v893_v14  ;;  %v1026_v56 = vsel %vm792_vm1, %v1025_v10, %v1021_v9  ;;  %v899_v24 = vand.u32 2147483647, %v867_v12 }
 0x202   : > { %v1033_v20 = vsub.f32 %v1026_v56, %v1032_v28 }
 0x203   : > { %v895_v21 = vmul.f32 100.0, %v894_v18  ;;  %v906_v22 = vand.u32 2147483647, %v905_v17  ;;  %v908_v23 = vmul.f32 0.5, %v905_v17  ;;  %vm900_vm11 = vcmp.lt.f32.partialorder %v899_v24, 5.0 }
 0x204   : > { %v1034_v11 = vmul.f32 100.0, %v1033_v20 }
 0x205   : > { %v896_v5 = vand.u32 2147483647, %v895_v21  ;;  %v909_v16 = vmul.f32 %v908_v23, %v905_v17  ;;  %v1468_v27 = vadd.f32 -0.5, %v906_v22  ;;  %vm907_vm9 = vcmp.lt.f32.partialorder %v906_v22, 1.0 }
 0x206   : > { %v1035_v29 = vand.u32 2147483647, %v1034_v11 }
 0x207   : > { %vm897_vm7 = vcmp.lt.f32.partialorder %v896_v5, 1.0  ;;  %v911_v35 = vsel %vm907_vm9, %v909_v16, %v1468_v27 }
 0x208   : > { %vm898_vm10 = vmand %vm897_vm7, %vm796_vm6  ;;  %vm1036_vm12 = vcmp.lt.f32.partialorder %v1035_v29, 1.0 }
 0x209   : > { %vm901_vm13 = vmand %vm898_vm10, %vm900_vm11 }
 0x20a   : > { %vm904_vm14 = vmand %vm901_vm13, %vm903_vm8 }
 0x20b   : > { %v1469_v37 = vsel %vm904_vm14, 1.0, %v2159_v36  ;;  %v912_v38 = vsel %vm904_vm14, %v911_v35, 0.0  ;;  %vm1037_vm1 = vmand %vm1036_vm12, %vm796_vm6 }
 0x20c   : > { %924 = vadd.xlane.f32.xlu1 %v1469_v37  ;;  %913 = vadd.xlane.f32.xlu0 %v912_v38  ;;  %vm1040_vm3 = vmand %vm1037_vm1, %vm1039_vm2 }
 0x20d   : > { %vm1043_vm4 = vmand %vm1040_vm3, %vm1042_vm15 }
 0x20e   : > { %v1051_v40 = vsel %vm1043_vm4, %v1050_v39, 0.0  ;;  %v1471_v41 = vsel %vm1043_vm4, 1.0, %v2159_v36 }
 0x210   : > { %1052 = vadd.xlane.f32.xlu0 %v1051_v40 }
 0x214   : > { %1063 = vadd.xlane.f32.xlu0 %v1471_v41 }
 0x299   : > { %v925_v42 = vpop.xlane.xlu1 %924  ;;  %v914_v43 = vpop.xlane.xlu0 %913 }
 0x29a   : > { %v926_v44 = vrot.slane %v925_v42, 4  ;;  %v915_v45 = vrot.slane %v914_v43, 4 }
 0x29c   : > { %v927_v15 = vadd.f32 %v926_v44, %v925_v42  ;;  %v916_v46 = vadd.f32 %v915_v45, %v914_v43 }
 0x29d   : > { %v1053_v48 = vpop.xlane.xlu0 %1052 }
 0x29e   : > { %v928_v49 = vrot.slane %v927_v15, 2  ;;  %v917_v32 = vrot.slane %v916_v46, 2  ;;  %v1054_v50 = vrot.slane %v1053_v48, 4 }
 0x2a0   : > { %v929_v51 = vadd.f32 %v928_v49, %v927_v15  ;;  %v1055_v52 = vadd.f32 %v1054_v50, %v1053_v48  ;;  %v918_v53 = vadd.f32 %v917_v32, %v916_v46 }
 0x2a1   : > { %v1064_v54 = vpop.xlane.xlu0 %1063 }
 0x2a2   : > { %v1056_v55 = vrot.slane %v1055_v52, 2  ;;  %v1065_v57 = vrot.slane %v1064_v54, 4  ;;  %v919_v58 = vrot.slane %v918_v53, 1  ;;  %v930_v59 = vrot.slane %v929_v51, 1 }
 0x2a4   : > { %v1066_v60 = vadd.f32 %v1065_v57, %v1064_v54  ;;  %v920_v61 = vadd.f32 %v919_v58, %v918_v53  ;;  %v931_v62 = vadd.f32 %v930_v59, %v929_v51  ;;  %v1057_v63 = vadd.f32 %v1056_v55, %v1055_v52 }
 0x2a6   : > { %v1067_v47 = vrot.slane %v1066_v60, 2  ;;  %1483 = vpush %v920_v61  ;;  %v1058_v1 = vrot.slane %v1057_v63, 1 }
 0x2a7   : > { %1485 = vpush %v931_v62 }
 0x2a8   : > { %v1068_v0 = vadd.f32 %v1067_v47, %v1066_v60  ;;  %v1059_v2 = vadd.f32 %v1058_v1, %v1057_v63 }
 0x2aa   : > { %1487 = vpush %v1059_v2  ;;  %v1069_v4 = vrot.slane %v1068_v0, 1 }
 0x2ac   : > { %v1070_v6 = vadd.f32 %v1069_v4, %v1068_v0 }
 0x2ae   : > { %1489 = vpush %v1070_v6 }
 0x2d7   : > { %s1484_s13 = spop %1483 }
 0x2d8   : > { %s2942_s9 = spop %1485 }
 0x2db   : > { %s1488_s4 = spop %1487 }
 0x2dc   : > { %s1072_s5 = sadd.f32 %s1488_s4, %s1484_s13  ;;  %s3213_s13 = smov %s3212_s22 }
 0x2dd   : > { %s2960_s4 = scalar_lea.hbm %s3212_s22, %s1475_s17 }
 0x2de   : > { %v1073_v34 = vstv %s1072_s5  ;;  %s2160_s5 = smov [#allocation18]  }
 0x2df   : > { %1074 = vst [vmem:[%s754_s19] sm:$0xff] %v1073_v34  ;;  %s2955_s11 = spop %1489  ;;  %s1937_s27 = sshll.u32 %s2160_s5, 4  ;;  %s1938_s27 = int_to_ptr.vmem [resolvable:$false] %s1937_s27 }
 0x2e0   : > { %s1075_s25 = sadd.f32 %s2955_s11, %s2942_s9  ;;  %s1939_s19 = scalar_lea.vmem %s1938_s27, 256 }
 0x2e1   : > { %p1940_p2 = scmp.lt.s32.totalorder %s2953_s20, %s1938_s27  ;;  %p1941_p12 = scmp.lt.s32.totalorder %s1939_s19, %s1933_s21 }
 0x2e3   : > { %p1942_p4 = por %p1941_p12, %p1940_p2 }
 0x2e5   : > { %p1943_p3 = pnand %p1942_p4, %p1936_p10 }
 0x2e7   : > { %1946 = shalt.err (!%p1943_p3)
}
 0x2e8   : > { %s1947_s17 = scalar_lea.hbm %s2948_s26, 128  ;;  %s1951_s22 = scalar_lea.hbm %s3211_s7, 512 }
 0x2e9   : > { %p1948_p7 = scmp.ne.s32.totalorder %s2948_s26, %s1947_s17  ;;  %p1952_p1 = scmp.lt.u32.totalorder %s2948_s26, %s3211_s7 }
 0x2ea   : > { %p1953_p6 = scmp.lt.u32.totalorder %s1951_s22, %s1947_s17  ;;  %p1955_p5 = scmp.lt.u32.totalorder %s1947_s17, %s2948_s26 }
 0x2eb   : > { %p1949_p9 = pnand %p1948_p7, %p3214_p0 }
 0x2ec   : > { %p1954_p13 = por %p1953_p6, %p1952_p1 }
 0x2ed   : > { %p1950_p11 = pneg %p1949_p9 }
 0x2ee   : > { %p1956_p8 = por %p1955_p5, %p1954_p13 }
 0x2f0   : > { %p1957_p10 = pnand %p1956_p8, %p1950_p11 }
 0x2f2   : > { %1960 = shalt.err (!%p1957_p10)
}
 0x2f3   : > { %1513 = dma.vmem_to_hbm [thread:$0]  (%p3214_p0), %s2953_s20, 128, %s2948_s26, %s1079_s14   ;;  %v1076_v28 = vstv %s1075_s25 }
 0x2f4   : > { %s3215_s21 = scalar_lea.vmem [#allocation19], %s2721_s6  ;;  %s1084_s19 = scalar_lea.sflag [#allocation20], %s2718_s10 }
 0x2f5   : > { %1077 = vst [vmem:[%s3215_s21] sm:$0xff] %v1076_v28  ;;  %s1961_s17 = scalar_lea.vmem %s2964_s3, 128  ;;  %s2161_s28 = smov [#allocation19]  }
 0x2f6   : > { %p1962_p2 = scmp.ne.s32.totalorder %s2964_s3, %s1961_s17  ;;  %s1965_s15 = sshll.u32 %s2161_s28, 4  ;;  %s1966_s15 = int_to_ptr.vmem [resolvable:$false] %s1965_s15 }
 0x2f7   : > { %s1967_s22 = scalar_lea.vmem %s1966_s15, 256  ;;  %p1968_p3 = scmp.lt.s32.totalorder %s2964_s3, %s1966_s15 }
 0x2f8   : > { %p1963_p12 = pnand %p1962_p2, %p3214_p0  ;;  %p1969_p7 = scmp.lt.s32.totalorder %s1967_s22, %s1961_s17 }
 0x2fa   : > { %p1964_p4 = pneg %p1963_p12  ;;  %p1970_p9 = por %p1969_p7, %p1968_p3 }
 0x2fc   : > { %p1971_p11 = pnand %p1970_p9, %p1964_p4 }
 0x2fe   : > { %1974 = shalt.err (!%p1971_p11)
}
 0x2ff   : > { %s1975_s10 = scalar_lea.hbm %s2960_s4, 128  ;;  %s1979_s20 = scalar_lea.hbm %s3213_s13, 512 }
 0x300   : > { %p1976_p1 = scmp.ne.s32.totalorder %s2960_s4, %s1975_s10  ;;  %p1980_p5 = scmp.lt.u32.totalorder %s2960_s4, %s3213_s13 }
 0x301   : > { %p1981_p8 = scmp.lt.u32.totalorder %s1979_s20, %s1975_s10  ;;  %p1983_p2 = scmp.lt.u32.totalorder %s1975_s10, %s2960_s4 }
 0x302   : > { %p1977_p6 = pnand %p1976_p1, %p3214_p0 }
 0x303   : > { %p1982_p10 = por %p1981_p8, %p1980_p5 }
 0x304   : > { %p1978_p13 = pneg %p1977_p6 }
 0x305   : > { %p1984_p12 = por %p1983_p2, %p1982_p10 }
 0x307   : > { %p1985_p4 = pnand %p1984_p12, %p1978_p13 }
 0x309   : > { %1988 = shalt.err (!%p1985_p4)
}
 0x30a   : > { %1514 = dma.vmem_to_hbm [thread:$0]  (%p3214_p0), %s2964_s3, 128, %s2960_s4, %s1084_s19  }
 0x30b PF: > { %s3216_s25 = sld [smem:[#allocation35_spill]]  ;;  %s3217_s14 = sld [smem:[#allocation40_spill]] }
 0x30c   : > { %p1558_p3 = scmp.ge.s32.totalorder %s2143_s30, 2 }
 0x311   : > { %s1126_s5 = sand.u32 1, %s3216_s25   ;;  %p3218_p7 = scmp.ne.s32.totalorder %s3217_s14, 0 }
 0x312   : > { %s1127_s27 = scalar_lea.sflag [#allocation4], %s1126_s5 }
 0x313   : > { %p1547_p9 = pnand %p1558_p3, %p3218_p7 }
 0x315   : > { %2078 = dma.done.wait (!%p1547_p9), %s1127_s27, 128  }
 0x316   : > { %2080 = vsyncadd (!%p1547_p9), %s1127_s27, 4294967168  ;;  %s1136_s21 = scalar_lea.sflag [#allocation20], %s1126_s5 }
 0x317   : > { %2082 = dma.done.wait (!%p1547_p9), %s1136_s21, 128  }
 0x318   : > { %2084 = vsyncadd (!%p1547_p9), %s1136_s21, 4294967168  ;;  %s42_s30 = sadd.s32 1, %s2143_s30   ;;  %s3220_s3 = sld [smem:[#allocation31_spill]] }
 0x319   : > { %p3020_p11 = scmp.ge.s32.totalorder %s42_s30, 6   ;;  %s3221_s19 = sld [smem:[#allocation45_spill]] }
 0x31a   : > { %s3222_s20 = sld [smem:[#allocation33_spill]]  ;;  %s3223_s21 = sld [smem:[#allocation34_spill]] }
 0x31b   : > { %s3224_s4 = sld [smem:[#allocation36_spill]]  ;;  %s3225_s25 = sld [smem:[#allocation44_spill]] }
 0x31c   : > { %s3226_s26 = sld [smem:[#allocation39_spill]]  ;;  %s3227_s28 = sld [smem:[#allocation42_spill]] }
 0x31d   : > { %s3228_s15 = sld [smem:[#allocation43_spill]]  ;;  %s3229_s17 = smov %s2095_s18 }
 0x31e   : > { %s3230_s18 = smov %s3220_s3  ;;  %s3231_s22 = smov %s3243_s23 }
 0x31f   : > { %s3232_s23 = smov %s2119_s24  ;;  %s3234_s27 = smov %s2139_s29 }
 0x320   :  { %41 = sbr.rel (!%p3020_p11) target bundleno = 33 (0x21), region = 209 }
 0x321   : > { %s3233_s24 = smov %s3224_s4 }
 0x323   : > { %s3235_s29 = smov %s3228_s15 }
 0x327   :  { %1141 = vsyncpa [#allocation3], 1 }
 0x328   :  { %1143 = vsyncpa [#allocation3 + $0x1], 1 }
 0x329   :  { %1144 = vsyncpa [#allocation10], 1 }
 0x32a   :  { %1146 = vsyncpa [#allocation10 + $0x1], 1 }
 0x32b   :  { %1147 = vsyncpa [#allocation13], 1 }
 0x32c   :  { %1149 = vsyncpa [#allocation13 + $0x1], 1 }
 0x32d   :  { %1150 = vsyncpa [#allocation16], 1 }
 0x32e   :  { %1152 = vsyncpa [#allocation16 + $0x1], 1 }
 0x32f   :  { %1153 = vsyncpa [#allocation4], 1 }
 0x330   :  { %1155 = vsyncpa [#allocation4 + $0x1], 1 }
 0x331   :  { %1156 = vsyncpa [#allocation20], 1 }
 0x332   :  { %1158 = vsyncpa [#allocation20 + $0x1], 1 }
 0x333   :  { %1159 = vsyncpa [#allocation5], 1 }
 0x334   :  { %1161 = vsyncpa [#allocation5 + $0x1], 1 }
 0x335   :  { %1162 = vsyncpa [#allocation6], 1 }
 0x336   :  { %1164 = vsyncpa [#allocation6 + $0x1], 1 }

</bundles_post_ra>
